<compile_context>
chip_gen: v6e
topology: v6e:2x2x1
jax: 0.10.0
libtpu: 0.0.40
codegen_flags: <defaults>
</compile_context>

<pallas_src>
import numpy as np

import jax
import jax.numpy as jnp
from jax.experimental import pallas as pl
from jax.experimental.pallas import tpu as pltpu

LATENT = 16
NUM_LABELS = 10

# name, kind, H_in, H_out, Cin, W_in, OC, W_out, pad, crop, row_hb, col_hb
_CONV_LAYERS = (
    ("conv0", "conv",  28, 14, 1,  28, 8,  14, 1, 0, False, False),
    ("conv1", "conv",  14, 7,  8,  14, 16, 7,  1, 0, False, False),
    ("conv2", "conv",  7,  3,  16, 7,  32, 3,  1, 0, True,  False),
    ("dec1",  "convT", 6,  14, 16, 6,  8,  14, 0, 0, False, True),
    ("dec2",  "convT", 14, 28, 8,  14, 1,  28, 0, 1, False, False),
)

_BIAS_OFF = {"conv0": 0, "conv1": 128, "conv2": 256, "enc": 384,
             "dec1": 512, "dec2": 640, "dec_head": 768}
_BIAS_TOTAL = 768 + 6 * 128          # 1536 f32 lanes


def _round16(n):
    return (n + 15) // 16 * 16


def _layout(B):
    """Static row layout of the single packed bf16 weight buffer for batch B."""
    meta = {"layers": {}}
    off = 0

    def alloc(rows):
        nonlocal off
        start = off
        off += _round16(rows)
        return start

    for (name, _kind, Hi, Ho, *_rest) in _CONV_LAYERS:
        R = B * Ho
        meta["layers"][name] = dict(
            sh_off=alloc(4 * R), sh_rows=4 * R, sh_cols=B * Hi,
            m_off=alloc(4 * 128), R=R, b_off=_BIAS_OFF[name])
    meta["enc_off"] = alloc(3 * 128)
    meta["total_rows"] = off
    meta["width"] = 128 * max(1, -(-(B * 28) // 128))
    return meta


# ----------------------------------------------------------------------------
# Parameter packing: per-kernel-row selection / mixing matrices (stacked).
# ----------------------------------------------------------------------------
def _sh_conv(B, h_in, h_out, kh, stride, pad, row_hb=False, col_hb=False):
    """Row-selection matrix for Conv2d kernel row kh (0/1 entries)."""
    m = np.zeros((B * h_out, B * h_in), np.float32)
    for b in range(B):
        for ho in range(h_out):
            h = stride * ho + kh - pad
            if 0 <= h < h_in:
                r = (ho * B + b) if row_hb else (b * h_out + ho)
                c = (h * B + b) if col_hb else (b * h_in + h)
                m[r, c] = 1.0
    return m


def _sh_convT(B, h_in, h_out, ky, stride, pad, crop, row_hb=False, col_hb=False):
    """Row-selection matrix for ConvTranspose2d kernel row ky (crop folded)."""
    m = np.zeros((B * h_out, B * h_in), np.float32)
    for b in range(B):
        for iy in range(h_in):
            oy = stride * iy + ky - pad - crop
            if 0 <= oy < h_out:
                r = (oy * B + b) if row_hb else (b * h_out + oy)
                c = (iy * B + b) if col_hb else (b * h_in + iy)
                m[r, c] = 1.0
    return m


def _m_conv(w, kh, w_in, w_out, stride, pad):
    """Column-select + channel-mix matrix for Conv2d kernel row kh."""
    oc, ic, K, _ = w.shape
    m = np.zeros((ic, w_in, oc, w_out), np.float32)
    for wo in range(w_out):
        for kw in range(K):
            wi = stride * wo + kw - pad
            if 0 <= wi < w_in:
                m[:, wi, :, wo] = w[:, :, kh, kw].T
    return m.reshape(ic * w_in, oc * w_out)


def _m_convT(w, ky, w_in, w_out, stride, pad, crop):
    """Column-select + channel-mix matrix for ConvTranspose2d kernel row ky."""
    ic, oc, K, _ = w.shape
    m = np.zeros((ic, w_in, oc, w_out), np.float32)
    for ix in range(w_in):
        for kx in range(K):
            ox = stride * ix + kx - pad - crop
            if 0 <= ox < w_out:
                m[:, ix, :, ox] = w[:, :, ky, kx]
    return m.reshape(ic * w_in, oc * w_out)


def _dec_head(wfc1, bfc1, w_dec0, b_dec0):
    """Compose decoder fc1 with the first ConvTranspose2d (no nonlinearity between)."""
    IC, OC, K, _ = w_dec0.shape          # 32, 16, 4
    Hi = Wi = 3
    Ho = Wo = 6
    off = 1                              # dec0 padding
    G = np.zeros((IC * Hi * Wi, Ho, OC * Wo), np.float32)
    for c in range(IC):
        for iy in range(Hi):
            for ky in range(K):
                oy = 2 * iy + ky - off
                if not (0 <= oy < Ho):
                    continue
                for ix in range(Wi):
                    for kx in range(K):
                        ox = 2 * ix + kx - off
                        if not (0 <= ox < Wo):
                            continue
                        j = c * (Hi * Wi) + iy * Wi + ix
                        G[j, oy, ox::Wo] += w_dec0[c, :, ky, kx]
    Gf = G.reshape(IC * Hi * Wi, Ho * OC * Wo)            # (288, 576)
    WG = wfc1.T @ Gf                                      # (27, 576)
    BG = bfc1 @ Gf + np.tile(np.repeat(b_dec0, Wo), Ho)   # (576,)
    return WG, BG


def pack_params(params, batch):
    """Pre-pack PyTorch-convention VAE params into 3 kernel operands."""
    P = {k: np.asarray(v, dtype=np.float32) for k, v in params.items()}
    B = batch
    meta = _layout(B)
    wbuf = np.zeros((meta["total_rows"], meta["width"]), np.float32)
    bbuf = np.zeros((1, _BIAS_TOTAL), np.float32)

    conv_w = {"conv0": ("e_conv0_w", "e_conv0_b"),
              "conv1": ("e_conv1_w", "e_conv1_b"),
              "conv2": ("e_conv2_w", "e_conv2_b"),
              "dec1": ("d_dec1_w", "d_dec1_b"),
              "dec2": ("d_dec2_w", "d_dec2_b")}

    for (name, kind, Hi, Ho, _Ci, Wi, Co, Wo, pad, crop, rhb, chb) in _CONV_LAYERS:
        w = P[conv_w[name][0]]
        b = P[conv_w[name][1]]
        m = meta["layers"][name]
        if kind == "conv":
            sh = np.concatenate([_sh_conv(B, Hi, Ho, k, 2, pad, rhb, chb)
                                 for k in range(4)], axis=0)
            mks = [_m_conv(w, k, Wi, Wo, 2, pad) for k in range(4)]
        else:
            sh = np.concatenate([_sh_convT(B, Hi, Ho, k, 2, pad, crop, rhb, chb)
                                 for k in range(4)], axis=0)
            mks = [_m_convT(w, k, Wi, Wo, 2, pad, crop) for k in range(4)]
        wbuf[m["sh_off"]:m["sh_off"] + sh.shape[0], :sh.shape[1]] = sh
        for k in range(4):
            wbuf[m["m_off"] + k * 128:m["m_off"] + k * 128 + mks[k].shape[0],
                 :mks[k].shape[1]] = mks[k]
        bbuf[0, m["b_off"]:m["b_off"] + Co * Wo] = np.repeat(b, Wo)

    # Encoder fc1 + fused mean/log_var heads (pre-composed, no nonlinearity).
    f = P["e_fc1_w"].reshape(64, 32, 3, 3).transpose(2, 1, 3, 0).reshape(288, 64)
    bf = P["e_fc1_b"]
    wml = np.concatenate([P["e_mean_w"].T, P["e_lv_w"].T], axis=1)    # (53, 32)
    bml = np.concatenate([P["e_mean_b"], P["e_lv_b"]])
    wenc = np.concatenate([f, f[:, :53] @ wml], axis=1)               # (288, 96)
    benc = np.concatenate([bf, bf[:53] @ wml + bml])                  # (96,)
    eo = meta["enc_off"]
    for h in range(3):
        wbuf[eo + h * 128:eo + h * 128 + 96, :96] = wenc[h * 96:(h + 1) * 96, :]
    bbuf[0, _BIAS_OFF["enc"]:_BIAS_OFF["enc"] + 96] = benc

    # Decoder fc1 composed with dec0 (ConvTranspose2d), laid out in 6 blocks
    # of 128 lanes (one per output height row).
    WG, BG = _dec_head(P["d_fc1_w"], P["d_fc1_b"], P["d_dec0_w"], P["d_dec0_b"])
    wdec = np.zeros((32, 6 * 128), np.float32)
    for oy in range(6):
        wdec[:27, oy * 128:oy * 128 + 96] = WG[:, oy * 96:(oy + 1) * 96]
        bbuf[0, _BIAS_OFF["dec_head"] + oy * 128:
                _BIAS_OFF["dec_head"] + oy * 128 + 96] = BG[oy * 96:(oy + 1) * 96]

    return {"w": jnp.asarray(wbuf, dtype=jnp.bfloat16),
            "wdec": jnp.asarray(wdec, dtype=jnp.bfloat16),
            "b": jnp.asarray(bbuf, dtype=jnp.float32)}


# ----------------------------------------------------------------------------
# The fused Pallas kernel (whole forward pass).
# ----------------------------------------------------------------------------
def vae_forward(packed, x, eps):
    """mode='recon' forward; one fused Pallas kernel for the whole network."""
    B = x.shape[0]
    meta = _layout(B)
    w, wdec, b = packed["w"], packed["wdec"], packed["b"]
    if w.shape != (meta["total_rows"], meta["width"]):
        raise ValueError(
            "pack_params() batch does not match x batch: packed weight shape "
            f"{w.shape}, expected {(meta['total_rows'], meta['width'])}")

    x2 = jnp.pad(x.astype(jnp.bfloat16).reshape(B * 28, 28), ((0, 0), (0, 100)))
    eps32 = eps.astype(jnp.float32)
    layers = meta["layers"]
    enc_off = meta["enc_off"]

    def kernel(x_ref, eps_ref, w_ref, wdec_ref, b_ref, recon_ref, hm_ref):
        f32, bf16 = jnp.float32, jnp.bfloat16

        def conv_layer(vb, name, act):
            m = layers[name]
            R = m["R"]
            sh = w_ref[m["sh_off"]:m["sh_off"] + m["sh_rows"], 0:m["sh_cols"]]
            rows = jnp.dot(sh, vb, preferred_element_type=f32)        # (4R, 128)
            cat = jnp.concatenate(
                [rows[k * R:(k + 1) * R, :] for k in range(4)],
                axis=1).astype(bf16)                                  # (R, 512)
            mat = w_ref[m["m_off"]:m["m_off"] + 4 * 128, 0:128]
            out = jnp.dot(cat, mat, preferred_element_type=f32)
            out = out + b_ref[:, m["b_off"]:m["b_off"] + 128]
            if act == "relu":
                return jnp.maximum(out, 0.0)
            return 1.0 / (1.0 + jnp.exp(-out))                        # sigmoid

        # ---------------- encoder convs ----------------
        v = conv_layer(x_ref[...], "conv0", "relu")                   # (B*14, 128)
        v = conv_layer(v.astype(bf16), "conv1", "relu")               # (B*7, 128)
        v = conv_layer(v.astype(bf16), "conv2", "relu")               # (3B, 128), rows (h,b)

        # ------- encoder fc1 + mean/log_var heads: one matmul -------
        enc_in = jnp.concatenate(
            [v[h * B:(h + 1) * B, :] for h in range(3)], axis=1).astype(bf16)  # (B, 384)
        wenc = w_ref[enc_off:enc_off + 3 * 128, 0:96]
        hm = (jnp.dot(enc_in, wenc, preferred_element_type=f32)
              + b_ref[:, _BIAS_OFF["enc"]:_BIAS_OFF["enc"] + 96])     # (B, 96)
        hm_ref[...] = hm

        hidden = hm[:, :64]
        mu = hm[:, 64:64 + LATENT]
        log_var = hm[:, 64 + LATENT:64 + 2 * LATENT]
        z = mu + eps_ref[...] * jnp.exp(0.5 * log_var)                # reparameterize
        yhat = hidden[:, 64 - 1 - NUM_LABELS:63]
        ey = jnp.exp(yhat - jnp.max(yhat, axis=-1, keepdims=True))
        sm = ey / jnp.sum(ey, axis=-1, keepdims=True)                 # softmax(yhat)
        dcol = hidden[:, 63:64]

        # --- decoder fc1 + first ConvTranspose2d fused into one weight ---
        bd = b_ref[:, _BIAS_OFF["dec_head"]:_BIAS_OFF["dec_head"] + 6 * 128]
        hd = jnp.dot(z.astype(bf16), wdec_ref[0:LATENT, :],
                     preferred_element_type=f32)
        hd = hd + jnp.dot(sm.astype(bf16),
                          wdec_ref[LATENT:LATENT + NUM_LABELS, :],
                          preferred_element_type=f32)
        hd = hd + dcol * wdec_ref[LATENT + NUM_LABELS:
                                  LATENT + NUM_LABELS + 1, :].astype(f32)
        hd = hd + bd                                                  # (B, 768)
        vdec = jnp.concatenate(
            [hd[:, oy * 128:(oy + 1) * 128] for oy in range(6)], axis=0)  # (6B, 128)
        v = jnp.maximum(vdec, 0.0)                                    # dec0 ReLU, rows (h,b)

        # ---------------- decoder transposed convs ----------------
        v = conv_layer(v.astype(bf16), "dec1", "relu")                # (B*14, 128)
        v = conv_layer(v.astype(bf16), "dec2", "sigmoid")             # (B*28, 128), lane-dense
        recon_ref[...] = v

    out_shape = (
        jax.ShapeDtypeStruct((B * 28, 128), jnp.float32),   # recon, lanes 0..27 valid
        jax.ShapeDtypeStruct((B, 96), jnp.float32),         # [hidden | mu | log_var]
    )
    ops = [x2, eps32, w, wdec, b]

    def full_spec(shape):
        n = len(shape)
        return pl.BlockSpec(shape, lambda i, n=n: (0,) * n)

    recon_p, hm = pl.pallas_call(
        kernel,
        out_shape=out_shape,
        grid=(1,),
        in_specs=[full_spec(a.shape) for a in ops],
        out_specs=tuple(full_spec(s.shape) for s in out_shape),
        compiler_params=pltpu.CompilerParams(
            dimension_semantics=("arbitrary",)),
    )(*ops)

    recon = recon_p[:, :28].reshape(B, 1, 28, 28)
    hidden = hm[:, :64]
    means = hm[:, 64:64 + LATENT]
    log_var = hm[:, 64 + LATENT:]
    d = hidden[:, -1]
    yhat = hidden[:, -1 - NUM_LABELS:-1]
    return recon, means, log_var, d, yhat


# ----------------------------------------------------------------------------
# Pure-JAX (XLA) reference of the original per-layer formulation,
# used only to validate the fused kernel numerically.
# ----------------------------------------------------------------------------
def _ref_conv2d(x, w, b, stride, pad):
    B, C, H, W = x.shape
    OC, IC, K, _ = w.shape
    xp = jnp.pad(x, ((0, 0), (0, 0), (pad, pad), (pad, pad)))
    Ho = (H + 2 * pad - K) // stride + 1
    Wo = (W + 2 * pad - K) // stride + 1
    patches = []
    for kh in range(K):
        for kw in range(K):
            patches.append(xp[:, :,
                              kh:kh + stride * (Ho - 1) + 1:stride,
                              kw:kw + stride * (Wo - 1) + 1:stride])
    cols = jnp.stack(patches, axis=2)                    # (B, C, K*K, Ho, Wo)
    cols = cols.transpose(0, 3, 4, 1, 2).reshape(B * Ho * Wo, C * K * K)
    out = cols @ w.reshape(OC, IC * K * K).T + b
    return out.reshape(B, Ho, Wo, OC).transpose(0, 3, 1, 2)


def _ref_convT2d(x, w_t, b, stride, pad):
    B, C, H, W = x.shape
    IC, OC, K, _ = w_t.shape
    xd = jnp.zeros((B, C, (H - 1) * stride + 1, (W - 1) * stride + 1), x.dtype)
    xd = xd.at[:, :, ::stride, ::stride].set(x)
    w_eq = jnp.flip(w_t, axis=(2, 3)).transpose(1, 0, 2, 3)
    return _ref_conv2d(xd, w_eq, b, 1, K - 1 - pad)


def vae_forward_ref(params, x, eps):
    B = x.shape[0]
    h = jax.nn.relu(_ref_conv2d(x, params["e_conv0_w"], params["e_conv0_b"], 2, 1))
    h = jax.nn.relu(_ref_conv2d(h, params["e_conv1_w"], params["e_conv1_b"], 2, 1))
    h = jax.nn.relu(_ref_conv2d(h, params["e_conv2_w"], params["e_conv2_b"], 2, 1))
    h = h.reshape(B, -1)
    hidden = h @ params["e_fc1_w"].T + params["e_fc1_b"]
    d = hidden[:, -1]
    yhat = hidden[:, -1 - NUM_LABELS:-1]
    feat = hidden[:, :-1 - NUM_LABELS]
    means = feat @ params["e_mean_w"].T + params["e_mean_b"]
    log_var = feat @ params["e_lv_w"].T + params["e_lv_b"]
    z = means + eps * jnp.exp(0.5 * log_var)
    zc = jnp.concatenate([z, jax.nn.softmax(yhat, axis=-1), d[:, None]], axis=-1)
    hd = zc @ params["d_fc1_w"].T + params["d_fc1_b"]
    xd = hd.reshape(B, 32, 3, 3)
    xd = jax.nn.relu(_ref_convT2d(xd, params["d_dec0_w"], params["d_dec0_b"], 2, 1))
    xd = jax.nn.relu(_ref_convT2d(xd, params["d_dec1_w"], params["d_dec1_b"], 2, 0))
    xd = jax.nn.sigmoid(_ref_convT2d(xd, params["d_dec2_w"], params["d_dec2_b"], 2, 0))
    return xd[:, :, 1:-1, 1:-1], means, log_var, d, yhat


# ----------------------------------------------------------------------------
# Deterministic parameter init (shapes from the module's __init__)
# ----------------------------------------------------------------------------
def init_params(key):
    shapes = {
        "e_conv0_w": (8, 1, 4, 4),   "e_conv0_b": (8,),
        "e_conv1_w": (16, 8, 4, 4),  "e_conv1_b": (16,),
        "e_conv2_w": (32, 16, 4, 4), "e_conv2_b": (32,),
        "e_fc1_w": (64, 288),        "e_fc1_b": (64,),
        "e_mean_w": (LATENT, 64 - 1 - NUM_LABELS), "e_mean_b": (LATENT,),
        "e_lv_w": (LATENT, 64 - 1 - NUM_LABELS),   "e_lv_b": (LATENT,),
        "d_fc1_w": (288, LATENT + NUM_LABELS + 1), "d_fc1_b": (288,),
        "d_dec0_w": (32, 16, 4, 4), "d_dec0_b": (16,),
        "d_dec1_w": (16, 8, 4, 4),  "d_dec1_b": (8,),
        "d_dec2_w": (8, 1, 4, 4),   "d_dec2_b": (1,),
    }
    names = sorted(shapes)
    keys = jax.random.split(key, len(names))
    return {n: (0.05 * jax.random.normal(k, shapes[n])).astype(jnp.float32)
            for n, k in zip(names, keys)}


if __name__ == "__main__":
    key = jax.random.PRNGKey(0)
    k_x, k_eps, k_p = jax.random.split(key, 3)

    batch = 2
    x = jax.random.uniform(k_x, (batch, 1, 28, 28), dtype=jnp.float32)
    eps = jax.random.normal(k_eps, (batch, LATENT), dtype=jnp.float32)
    params = init_params(k_p)
    packed = pack_params(params, batch)

    fwd = jax.jit(vae_forward)
    recon, means, log_var, d, yhat = fwd(packed, x, eps)
    jax.block_until_ready(recon)

    assert recon.shape == (batch, 1, 28, 28)
    assert means.shape == (batch, LATENT)
    assert log_var.shape == (batch, LATENT)
    assert d.shape == (batch,)
    assert yhat.shape == (batch, NUM_LABELS)
    assert bool(jnp.all(jnp.isfinite(recon)))

    # Cross-check the fused bf16 kernel against the pure-JAX f32 reference.
    r_recon, r_means, r_lv, r_d, r_yhat = jax.jit(vae_forward_ref)(params, x, eps)
    np.testing.assert_allclose(np.asarray(recon), np.asarray(r_recon), atol=2e-2)
    np.testing.assert_allclose(np.asarray(means), np.asarray(r_means), atol=1e-2)
    np.testing.assert_allclose(np.asarray(log_var), np.asarray(r_lv), atol=1e-2)
    np.testing.assert_allclose(np.asarray(d), np.asarray(r_d), atol=1e-2)
    np.testing.assert_allclose(np.asarray(yhat), np.asarray(r_yhat), atol=1e-2)

    print("KERNEL_OK")
</pallas_src>

<mosaic_0001>
module attributes {stable_mosaic.version = 11 : i64} {
  func.func @kernel(%arg0: i32, %arg1: memref<56x128xbf16, #tpu.memory_space<vmem>>, %arg2: memref<2x16xf32, #tpu.memory_space<vmem>>, %arg3: memref<3488x128xbf16, #tpu.memory_space<vmem>>, %arg4: memref<32x768xbf16, #tpu.memory_space<vmem>>, %arg5: memref<1x1536xf32, #tpu.memory_space<vmem>>, %arg6: memref<56x128xf32, #tpu.memory_space<vmem>>, %arg7: memref<2x96xf32, #tpu.memory_space<vmem>>) attributes {dimension_semantics = [#tpu.dimension_semantics<arbitrary>], iteration_bounds = array<i64: 1>, scalar_prefetch = 0 : i64, scratch_operands = 0 : i64, tpu.core_type = #tpu.core_type<tc>, window_params = [{pipeline_mode = #tpu.pipeline_mode<synchronous>, transform_indices = @transform_0, window_bounds = array<i64: 56, 128>}, {pipeline_mode = #tpu.pipeline_mode<synchronous>, transform_indices = @transform_1, window_bounds = array<i64: 2, 16>}, {pipeline_mode = #tpu.pipeline_mode<synchronous>, transform_indices = @transform_2, window_bounds = array<i64: 3488, 128>}, {pipeline_mode = #tpu.pipeline_mode<synchronous>, transform_indices = @transform_3, window_bounds = array<i64: 32, 768>}, {pipeline_mode = #tpu.pipeline_mode<synchronous>, transform_indices = @transform_4, window_bounds = array<i64: 1, 1536>}, {pipeline_mode = #tpu.pipeline_mode<synchronous>, transform_indices = @transform_5, window_bounds = array<i64: 56, 128>}, {pipeline_mode = #tpu.pipeline_mode<synchronous>, transform_indices = @transform_6, window_bounds = array<i64: 2, 96>}]} {
    %c0 = arith.constant 0 : index
    %c0_0 = arith.constant 0 : index
    %0 = vector.load %arg1[%c0, %c0_0] : memref<56x128xbf16, #tpu.memory_space<vmem>>, vector<56x128xbf16>
    %c0_1 = arith.constant 0 : index
    %c0_2 = arith.constant 0 : index
    %1 = vector.load %arg3[%c0_1, %c0_2] : memref<3488x128xbf16, #tpu.memory_space<vmem>>, vector<112x56xbf16>
    %cst = arith.constant dense<0.000000e+00> : vector<112x128xf32>
    %2 = tpu.matmul %1, %0, %cst {dimension_numbers = #tpu.dot_dimension_numbers<[1], [0], [0], [1], [0, 0, 1, 1], [], []>} : vector<112x56xbf16>, vector<56x128xbf16>, vector<112x128xf32> -> vector<112x128xf32>
    %3 = vector.extract_strided_slice %2 {offsets = [0, 0], sizes = [28, 128], strides = [1, 1]} : vector<112x128xf32> to vector<28x128xf32>
    %4 = vector.extract_strided_slice %2 {offsets = [28, 0], sizes = [28, 128], strides = [1, 1]} : vector<112x128xf32> to vector<28x128xf32>
    %5 = vector.extract_strided_slice %2 {offsets = [56, 0], sizes = [28, 128], strides = [1, 1]} : vector<112x128xf32> to vector<28x128xf32>
    %6 = vector.extract_strided_slice %2 {offsets = [84, 0], sizes = [28, 128], strides = [1, 1]} : vector<112x128xf32> to vector<28x128xf32>
    %7 = tpu.concatenate %3, %4, %5, %6 in 1 : vector<28x128xf32>, vector<28x128xf32>, vector<28x128xf32>, vector<28x128xf32> -> vector<28x512xf32>
    %8 = arith.truncf %7 : vector<28x512xf32> to vector<28x512xbf16>
    %c112 = arith.constant 112 : index
    %c0_3 = arith.constant 0 : index
    %9 = vector.load %arg3[%c112, %c0_3] : memref<3488x128xbf16, #tpu.memory_space<vmem>>, vector<512x128xbf16>
    %cst_4 = arith.constant dense<0.000000e+00> : vector<28x128xf32>
    %10 = tpu.matmul %8, %9, %cst_4 {dimension_numbers = #tpu.dot_dimension_numbers<[1], [0], [0], [1], [0, 0, 1, 1], [], []>} : vector<28x512xbf16>, vector<512x128xbf16>, vector<28x128xf32> -> vector<28x128xf32>
    %c0_5 = arith.constant 0 : index
    %c0_6 = arith.constant 0 : index
    %11 = vector.load %arg5[%c0_5, %c0_6] : memref<1x1536xf32, #tpu.memory_space<vmem>>, vector<1x128xf32>
    %12 = vector.broadcast %11 : vector<1x128xf32> to vector<28x128xf32>
    %13 = arith.addf %10, %12 : vector<28x128xf32>
    %cst_7 = arith.constant 0.000000e+00 : f32
    %14 = vector.broadcast %cst_7 : f32 to vector<28x128xf32>
    %15 = arith.maximumf %13, %14 : vector<28x128xf32>
    %16 = arith.truncf %15 : vector<28x128xf32> to vector<28x128xbf16>
    %c624 = arith.constant 624 : index
    %c0_8 = arith.constant 0 : index
    %17 = vector.load %arg3[%c624, %c0_8] : memref<3488x128xbf16, #tpu.memory_space<vmem>>, vector<56x28xbf16>
    %cst_9 = arith.constant dense<0.000000e+00> : vector<56x128xf32>
    %18 = tpu.matmul %17, %16, %cst_9 {dimension_numbers = #tpu.dot_dimension_numbers<[1], [0], [0], [1], [0, 0, 1, 1], [], []>} : vector<56x28xbf16>, vector<28x128xbf16>, vector<56x128xf32> -> vector<56x128xf32>
    %19 = vector.extract_strided_slice %18 {offsets = [0, 0], sizes = [14, 128], strides = [1, 1]} : vector<56x128xf32> to vector<14x128xf32>
    %20 = vector.extract_strided_slice %18 {offsets = [14, 0], sizes = [14, 128], strides = [1, 1]} : vector<56x128xf32> to vector<14x128xf32>
    %21 = vector.extract_strided_slice %18 {offsets = [28, 0], sizes = [14, 128], strides = [1, 1]} : vector<56x128xf32> to vector<14x128xf32>
    %22 = vector.extract_strided_slice %18 {offsets = [42, 0], sizes = [14, 128], strides = [1, 1]} : vector<56x128xf32> to vector<14x128xf32>
    %23 = tpu.concatenate %19, %20, %21, %22 in 1 : vector<14x128xf32>, vector<14x128xf32>, vector<14x128xf32>, vector<14x128xf32> -> vector<14x512xf32>
    %24 = arith.truncf %23 : vector<14x512xf32> to vector<14x512xbf16>
    %c688 = arith.constant 688 : index
    %c0_10 = arith.constant 0 : index
    %25 = vector.load %arg3[%c688, %c0_10] : memref<3488x128xbf16, #tpu.memory_space<vmem>>, vector<512x128xbf16>
    %cst_11 = arith.constant dense<0.000000e+00> : vector<14x128xf32>
    %26 = tpu.matmul %24, %25, %cst_11 {dimension_numbers = #tpu.dot_dimension_numbers<[1], [0], [0], [1], [0, 0, 1, 1], [], []>} : vector<14x512xbf16>, vector<512x128xbf16>, vector<14x128xf32> -> vector<14x128xf32>
    %c0_12 = arith.constant 0 : index
    %c128 = arith.constant 128 : index
    %27 = vector.load %arg5[%c0_12, %c128] : memref<1x1536xf32, #tpu.memory_space<vmem>>, vector<1x128xf32>
    %28 = vector.broadcast %27 : vector<1x128xf32> to vector<14x128xf32>
    %29 = arith.addf %26, %28 : vector<14x128xf32>
    %cst_13 = arith.constant 0.000000e+00 : f32
    %30 = vector.broadcast %cst_13 : f32 to vector<14x128xf32>
    %31 = arith.maximumf %29, %30 : vector<14x128xf32>
    %32 = arith.truncf %31 : vector<14x128xf32> to vector<14x128xbf16>
    %c1200 = arith.constant 1200 : index
    %c0_14 = arith.constant 0 : index
    %33 = vector.load %arg3[%c1200, %c0_14] : memref<3488x128xbf16, #tpu.memory_space<vmem>>, vector<24x14xbf16>
    %cst_15 = arith.constant dense<0.000000e+00> : vector<24x128xf32>
    %34 = tpu.matmul %33, %32, %cst_15 {dimension_numbers = #tpu.dot_dimension_numbers<[1], [0], [0], [1], [0, 0, 1, 1], [], []>} : vector<24x14xbf16>, vector<14x128xbf16>, vector<24x128xf32> -> vector<24x128xf32>
    %35 = vector.extract_strided_slice %34 {offsets = [0, 0], sizes = [6, 128], strides = [1, 1]} : vector<24x128xf32> to vector<6x128xf32>
    %36 = vector.extract_strided_slice %34 {offsets = [6, 0], sizes = [6, 128], strides = [1, 1]} : vector<24x128xf32> to vector<6x128xf32>
    %37 = vector.extract_strided_slice %34 {offsets = [12, 0], sizes = [6, 128], strides = [1, 1]} : vector<24x128xf32> to vector<6x128xf32>
    %38 = vector.extract_strided_slice %34 {offsets = [18, 0], sizes = [6, 128], strides = [1, 1]} : vector<24x128xf32> to vector<6x128xf32>
    %39 = tpu.concatenate %35, %36, %37, %38 in 1 : vector<6x128xf32>, vector<6x128xf32>, vector<6x128xf32>, vector<6x128xf32> -> vector<6x512xf32>
    %40 = arith.truncf %39 : vector<6x512xf32> to vector<6x512xbf16>
    %c1232 = arith.constant 1232 : index
    %c0_16 = arith.constant 0 : index
    %41 = vector.load %arg3[%c1232, %c0_16] : memref<3488x128xbf16, #tpu.memory_space<vmem>>, vector<512x128xbf16>
    %cst_17 = arith.constant dense<0.000000e+00> : vector<6x128xf32>
    %42 = tpu.matmul %40, %41, %cst_17 {dimension_numbers = #tpu.dot_dimension_numbers<[1], [0], [0], [1], [0, 0, 1, 1], [], []>} : vector<6x512xbf16>, vector<512x128xbf16>, vector<6x128xf32> -> vector<6x128xf32>
    %c0_18 = arith.constant 0 : index
    %c256 = arith.constant 256 : index
    %43 = vector.load %arg5[%c0_18, %c256] : memref<1x1536xf32, #tpu.memory_space<vmem>>, vector<1x128xf32>
    %44 = vector.broadcast %43 : vector<1x128xf32> to vector<6x128xf32>
    %45 = arith.addf %42, %44 : vector<6x128xf32>
    %cst_19 = arith.constant 0.000000e+00 : f32
    %46 = vector.broadcast %cst_19 : f32 to vector<6x128xf32>
    %47 = arith.maximumf %45, %46 : vector<6x128xf32>
    %48 = vector.extract_strided_slice %47 {offsets = [0, 0], sizes = [2, 128], strides = [1, 1]} : vector<6x128xf32> to vector<2x128xf32>
    %49 = vector.extract_strided_slice %47 {offsets = [2, 0], sizes = [2, 128], strides = [1, 1]} : vector<6x128xf32> to vector<2x128xf32>
    %50 = vector.extract_strided_slice %47 {offsets = [4, 0], sizes = [2, 128], strides = [1, 1]} : vector<6x128xf32> to vector<2x128xf32>
    %51 = tpu.concatenate %48, %49, %50 in 1 : vector<2x128xf32>, vector<2x128xf32>, vector<2x128xf32> -> vector<2x384xf32>
    %52 = arith.truncf %51 : vector<2x384xf32> to vector<2x384xbf16>
    %c3104 = arith.constant 3104 : index
    %c0_20 = arith.constant 0 : index
    %53 = vector.load %arg3[%c3104, %c0_20] : memref<3488x128xbf16, #tpu.memory_space<vmem>>, vector<384x96xbf16>
    %cst_21 = arith.constant dense<0.000000e+00> : vector<2x96xf32>
    %54 = tpu.matmul %52, %53, %cst_21 {dimension_numbers = #tpu.dot_dimension_numbers<[1], [0], [0], [1], [0, 0, 1, 1], [], []>} : vector<2x384xbf16>, vector<384x96xbf16>, vector<2x96xf32> -> vector<2x96xf32>
    %c0_22 = arith.constant 0 : index
    %c384 = arith.constant 384 : index
    %55 = vector.load %arg5[%c0_22, %c384] : memref<1x1536xf32, #tpu.memory_space<vmem>>, vector<1x96xf32>
    %56 = vector.broadcast %55 : vector<1x96xf32> to vector<2x96xf32>
    %57 = arith.addf %54, %56 : vector<2x96xf32>
    %c0_23 = arith.constant 0 : index
    %c0_24 = arith.constant 0 : index
    %58 = vector.load %arg7[%c0_23, %c0_24] : memref<2x96xf32, #tpu.memory_space<vmem>>, vector<2x96xf32>
    tpu.vector_store %arg7[%c0_23, %c0_24], %57 {strides = array<i32>} : memref<2x96xf32, #tpu.memory_space<vmem>>, vector<2x96xf32>,
    %59 = vector.extract_strided_slice %57 {offsets = [0, 0], sizes = [2, 64], strides = [1, 1]} : vector<2x96xf32> to vector<2x64xf32>
    %60 = vector.extract_strided_slice %57 {offsets = [0, 64], sizes = [2, 16], strides = [1, 1]} : vector<2x96xf32> to vector<2x16xf32>
    %61 = vector.extract_strided_slice %57 {offsets = [0, 80], sizes = [2, 16], strides = [1, 1]} : vector<2x96xf32> to vector<2x16xf32>
    %c0_25 = arith.constant 0 : index
    %c0_26 = arith.constant 0 : index
    %62 = vector.load %arg2[%c0_25, %c0_26] : memref<2x16xf32, #tpu.memory_space<vmem>>, vector<2x16xf32>
    %cst_27 = arith.constant 5.000000e-01 : f32
    %63 = vector.broadcast %cst_27 : f32 to vector<2x16xf32>
    %64 = arith.mulf %63, %61 : vector<2x16xf32>
    %65 = math.exp %64 : vector<2x16xf32>
    %66 = arith.mulf %62, %65 : vector<2x16xf32>
    %67 = arith.addf %60, %66 : vector<2x16xf32>
    %68 = vector.extract_strided_slice %59 {offsets = [0, 53], sizes = [2, 10], strides = [1, 1]} : vector<2x64xf32> to vector<2x10xf32>
    %cst_28 = arith.constant dense<0xFF800000> : vector<2xf32>
    %69 = vector.multi_reduction <maximumf>, %68, %cst_28 [1] : vector<2x10xf32> to vector<2xf32>
    %70 = vector.shape_cast %69 : vector<2xf32> to vector<2x1xf32>
    %71 = vector.broadcast %70 : vector<2x1xf32> to vector<2x10xf32>
    %72 = arith.subf %68, %71 : vector<2x10xf32>
    %73 = math.exp %72 : vector<2x10xf32>
    %cst_29 = arith.constant dense<0.000000e+00> : vector<2xf32>
    %74 = vector.multi_reduction <add>, %73, %cst_29 [1] : vector<2x10xf32> to vector<2xf32>
    %75 = vector.shape_cast %74 : vector<2xf32> to vector<2x1xf32>
    %76 = vector.broadcast %75 : vector<2x1xf32> to vector<2x10xf32>
    %77 = arith.divf %73, %76 : vector<2x10xf32>
    %78 = vector.extract_strided_slice %59 {offsets = [0, 63], sizes = [2, 1], strides = [1, 1]} : vector<2x64xf32> to vector<2x1xf32>
    %c0_30 = arith.constant 0 : index
    %c768 = arith.constant 768 : index
    %79 = vector.load %arg5[%c0_30, %c768] : memref<1x1536xf32, #tpu.memory_space<vmem>>, vector<1x768xf32>
    %80 = arith.truncf %67 : vector<2x16xf32> to vector<2x16xbf16>
    %c0_31 = arith.constant 0 : index
    %c0_32 = arith.constant 0 : index
    %81 = vector.load %arg4[%c0_31, %c0_32] : memref<32x768xbf16, #tpu.memory_space<vmem>>, vector<16x768xbf16>
    %cst_33 = arith.constant dense<0.000000e+00> : vector<2x768xf32>
    %82 = tpu.matmul %80, %81, %cst_33 {dimension_numbers = #tpu.dot_dimension_numbers<[1], [0], [0], [1], [0, 0, 1, 1], [], []>} : vector<2x16xbf16>, vector<16x768xbf16>, vector<2x768xf32> -> vector<2x768xf32>
    %83 = arith.truncf %77 : vector<2x10xf32> to vector<2x10xbf16>
    %c16 = arith.constant 16 : index
    %c0_34 = arith.constant 0 : index
    %84 = vector.load %arg4[%c16, %c0_34] : memref<32x768xbf16, #tpu.memory_space<vmem>>, vector<10x768xbf16>
    %cst_35 = arith.constant dense<0.000000e+00> : vector<2x768xf32>
    %85 = tpu.matmul %83, %84, %cst_35 {dimension_numbers = #tpu.dot_dimension_numbers<[1], [0], [0], [1], [0, 0, 1, 1], [], []>} : vector<2x10xbf16>, vector<10x768xbf16>, vector<2x768xf32> -> vector<2x768xf32>
    %86 = arith.addf %82, %85 : vector<2x768xf32>
    %c26 = arith.constant 26 : index
    %c0_36 = arith.constant 0 : index
    %87 = vector.load %arg4[%c26, %c0_36] : memref<32x768xbf16, #tpu.memory_space<vmem>>, vector<1x768xbf16>
    %88 = arith.extf %87 : vector<1x768xbf16> to vector<1x768xf32>
    %89 = vector.broadcast %78 : vector<2x1xf32> to vector<2x768xf32>
    %90 = vector.broadcast %88 : vector<1x768xf32> to vector<2x768xf32>
    %91 = arith.mulf %89, %90 : vector<2x768xf32>
    %92 = arith.addf %86, %91 : vector<2x768xf32>
    %93 = vector.broadcast %79 : vector<1x768xf32> to vector<2x768xf32>
    %94 = arith.addf %92, %93 : vector<2x768xf32>
    %95 = vector.extract_strided_slice %94 {offsets = [0, 0], sizes = [2, 128], strides = [1, 1]} : vector<2x768xf32> to vector<2x128xf32>
    %96 = vector.extract_strided_slice %94 {offsets = [0, 128], sizes = [2, 128], strides = [1, 1]} : vector<2x768xf32> to vector<2x128xf32>
    %97 = vector.extract_strided_slice %94 {offsets = [0, 256], sizes = [2, 128], strides = [1, 1]} : vector<2x768xf32> to vector<2x128xf32>
    %98 = vector.extract_strided_slice %94 {offsets = [0, 384], sizes = [2, 128], strides = [1, 1]} : vector<2x768xf32> to vector<2x128xf32>
    %99 = vector.extract_strided_slice %94 {offsets = [0, 512], sizes = [2, 128], strides = [1, 1]} : vector<2x768xf32> to vector<2x128xf32>
    %100 = vector.extract_strided_slice %94 {offsets = [0, 640], sizes = [2, 128], strides = [1, 1]} : vector<2x768xf32> to vector<2x128xf32>
    %101 = tpu.concatenate %95, %96, %97, %98, %99, %100 in 0 : vector<2x128xf32>, vector<2x128xf32>, vector<2x128xf32>, vector<2x128xf32>, vector<2x128xf32>, vector<2x128xf32> -> vector<12x128xf32>
    %cst_37 = arith.constant 0.000000e+00 : f32
    %102 = vector.broadcast %cst_37 : f32 to vector<12x128xf32>
    %103 = arith.maximumf %101, %102 : vector<12x128xf32>
    %104 = arith.truncf %103 : vector<12x128xf32> to vector<12x128xbf16>
    %c1744 = arith.constant 1744 : index
    %c0_38 = arith.constant 0 : index
    %105 = vector.load %arg3[%c1744, %c0_38] : memref<3488x128xbf16, #tpu.memory_space<vmem>>, vector<112x12xbf16>
    %cst_39 = arith.constant dense<0.000000e+00> : vector<112x128xf32>
    %106 = tpu.matmul %105, %104, %cst_39 {dimension_numbers = #tpu.dot_dimension_numbers<[1], [0], [0], [1], [0, 0, 1, 1], [], []>} : vector<112x12xbf16>, vector<12x128xbf16>, vector<112x128xf32> -> vector<112x128xf32>
    %107 = vector.extract_strided_slice %106 {offsets = [0, 0], sizes = [28, 128], strides = [1, 1]} : vector<112x128xf32> to vector<28x128xf32>
    %108 = vector.extract_strided_slice %106 {offsets = [28, 0], sizes = [28, 128], strides = [1, 1]} : vector<112x128xf32> to vector<28x128xf32>
    %109 = vector.extract_strided_slice %106 {offsets = [56, 0], sizes = [28, 128], strides = [1, 1]} : vector<112x128xf32> to vector<28x128xf32>
    %110 = vector.extract_strided_slice %106 {offsets = [84, 0], sizes = [28, 128], strides = [1, 1]} : vector<112x128xf32> to vector<28x128xf32>
    %111 = tpu.concatenate %107, %108, %109, %110 in 1 : vector<28x128xf32>, vector<28x128xf32>, vector<28x128xf32>, vector<28x128xf32> -> vector<28x512xf32>
    %112 = arith.truncf %111 : vector<28x512xf32> to vector<28x512xbf16>
    %c1856 = arith.constant 1856 : index
    %c0_40 = arith.constant 0 : index
    %113 = vector.load %arg3[%c1856, %c0_40] : memref<3488x128xbf16, #tpu.memory_space<vmem>>, vector<512x128xbf16>
    %cst_41 = arith.constant dense<0.000000e+00> : vector<28x128xf32>
    %114 = tpu.matmul %112, %113, %cst_41 {dimension_numbers = #tpu.dot_dimension_numbers<[1], [0], [0], [1], [0, 0, 1, 1], [], []>} : vector<28x512xbf16>, vector<512x128xbf16>, vector<28x128xf32> -> vector<28x128xf32>
    %c0_42 = arith.constant 0 : index
    %c512 = arith.constant 512 : index
    %115 = vector.load %arg5[%c0_42, %c512] : memref<1x1536xf32, #tpu.memory_space<vmem>>, vector<1x128xf32>
    %116 = vector.broadcast %115 : vector<1x128xf32> to vector<28x128xf32>
    %117 = arith.addf %114, %116 : vector<28x128xf32>
    %cst_43 = arith.constant 0.000000e+00 : f32
    %118 = vector.broadcast %cst_43 : f32 to vector<28x128xf32>
    %119 = arith.maximumf %117, %118 : vector<28x128xf32>
    %120 = arith.truncf %119 : vector<28x128xf32> to vector<28x128xbf16>
    %c2368 = arith.constant 2368 : index
    %c0_44 = arith.constant 0 : index
    %121 = vector.load %arg3[%c2368, %c0_44] : memref<3488x128xbf16, #tpu.memory_space<vmem>>, vector<224x28xbf16>
    %cst_45 = arith.constant dense<0.000000e+00> : vector<224x128xf32>
    %122 = tpu.matmul %121, %120, %cst_45 {dimension_numbers = #tpu.dot_dimension_numbers<[1], [0], [0], [1], [0, 0, 1, 1], [], []>} : vector<224x28xbf16>, vector<28x128xbf16>, vector<224x128xf32> -> vector<224x128xf32>
    %123 = vector.extract_strided_slice %122 {offsets = [0, 0], sizes = [56, 128], strides = [1, 1]} : vector<224x128xf32> to vector<56x128xf32>
    %124 = vector.extract_strided_slice %122 {offsets = [56, 0], sizes = [56, 128], strides = [1, 1]} : vector<224x128xf32> to vector<56x128xf32>
    %125 = vector.extract_strided_slice %122 {offsets = [112, 0], sizes = [56, 128], strides = [1, 1]} : vector<224x128xf32> to vector<56x128xf32>
    %126 = vector.extract_strided_slice %122 {offsets = [168, 0], sizes = [56, 128], strides = [1, 1]} : vector<224x128xf32> to vector<56x128xf32>
    %127 = tpu.concatenate %123, %124, %125, %126 in 1 : vector<56x128xf32>, vector<56x128xf32>, vector<56x128xf32>, vector<56x128xf32> -> vector<56x512xf32>
    %128 = arith.truncf %127 : vector<56x512xf32> to vector<56x512xbf16>
    %c2592 = arith.constant 2592 : index
    %c0_46 = arith.constant 0 : index
    %129 = vector.load %arg3[%c2592, %c0_46] : memref<3488x128xbf16, #tpu.memory_space<vmem>>, vector<512x128xbf16>
    %cst_47 = arith.constant dense<0.000000e+00> : vector<56x128xf32>
    %130 = tpu.matmul %128, %129, %cst_47 {dimension_numbers = #tpu.dot_dimension_numbers<[1], [0], [0], [1], [0, 0, 1, 1], [], []>} : vector<56x512xbf16>, vector<512x128xbf16>, vector<56x128xf32> -> vector<56x128xf32>
    %c0_48 = arith.constant 0 : index
    %c640 = arith.constant 640 : index
    %131 = vector.load %arg5[%c0_48, %c640] : memref<1x1536xf32, #tpu.memory_space<vmem>>, vector<1x128xf32>
    %132 = vector.broadcast %131 : vector<1x128xf32> to vector<56x128xf32>
    %133 = arith.addf %130, %132 : vector<56x128xf32>
    %cst_49 = arith.constant 0.000000e+00 : f32
    %134 = vector.broadcast %cst_49 : f32 to vector<56x128xf32>
    %135 = arith.subf %134, %133 : vector<56x128xf32>
    %136 = math.exp %135 : vector<56x128xf32>
    %cst_50 = arith.constant 1.000000e+00 : f32
    %137 = vector.broadcast %cst_50 : f32 to vector<56x128xf32>
    %138 = arith.addf %137, %136 : vector<56x128xf32>
    %cst_51 = arith.constant 1.000000e+00 : f32
    %139 = vector.broadcast %cst_51 : f32 to vector<56x128xf32>
    %140 = arith.divf %139, %138 : vector<56x128xf32>
    %c0_52 = arith.constant 0 : index
    %c0_53 = arith.constant 0 : index
    %141 = vector.load %arg6[%c0_52, %c0_53] : memref<56x128xf32, #tpu.memory_space<vmem>>, vector<56x128xf32>
    tpu.vector_store %arg6[%c0_52, %c0_53], %140 {strides = array<i32>} : memref<56x128xf32, #tpu.memory_space<vmem>>, vector<56x128xf32>,
    return
  }
  func.func @transform_0(%arg0: i32) -> (i32, i32) {
    %c0_i32 = arith.constant 0 : i32
    %c0_i32_0 = arith.constant 0 : i32
    %c0_i32_1 = arith.constant 0 : i32
    return %c0_i32, %c0_i32_0 : i32, i32
  }
  func.func @transform_1(%arg0: i32) -> (i32, i32) {
    %c0_i32 = arith.constant 0 : i32
    %c0_i32_0 = arith.constant 0 : i32
    %c0_i32_1 = arith.constant 0 : i32
    return %c0_i32, %c0_i32_0 : i32, i32
  }
  func.func @transform_2(%arg0: i32) -> (i32, i32) {
    %c0_i32 = arith.constant 0 : i32
    %c0_i32_0 = arith.constant 0 : i32
    %c0_i32_1 = arith.constant 0 : i32
    return %c0_i32, %c0_i32_0 : i32, i32
  }
  func.func @transform_3(%arg0: i32) -> (i32, i32) {
    %c0_i32 = arith.constant 0 : i32
    %c0_i32_0 = arith.constant 0 : i32
    %c0_i32_1 = arith.constant 0 : i32
    return %c0_i32, %c0_i32_0 : i32, i32
  }
  func.func @transform_4(%arg0: i32) -> (i32, i32) {
    %c0_i32 = arith.constant 0 : i32
    %c0_i32_0 = arith.constant 0 : i32
    %c0_i32_1 = arith.constant 0 : i32
    return %c0_i32, %c0_i32_0 : i32, i32
  }
  func.func @transform_5(%arg0: i32) -> (i32, i32) {
    %c0_i32 = arith.constant 0 : i32
    %c0_i32_0 = arith.constant 0 : i32
    %c0_i32_1 = arith.constant 0 : i32
    return %c0_i32, %c0_i32_0 : i32, i32
  }
  func.func @transform_6(%arg0: i32) -> (i32, i32) {
    %c0_i32 = arith.constant 0 : i32
    %c0_i32_0 = arith.constant 0 : i32
    %c0_i32_1 = arith.constant 0 : i32
    return %c0_i32, %c0_i32_0 : i32, i32
  }
}

</mosaic_0001>

<bundles_post_ra>
// kernel: vae_forward.1
= control target key start
LH: loop header
LB: loop body
LE: loop exit
PB: predicated region body
PF: predicated region fallthrough
CT: control target
= control target key end

     0   :  { %12 = vsyncpa [#allocation3], 0  ;;  %s5040_s0 = inlined_call_operand.vmem [shape: bf16[56,128], index: 0, kind: input, shape index: {}]   ;;  %s5041_s1 = inlined_call_operand.vmem [shape: f32[2,16], index: 1, kind: input, shape index: {}]   ;;  %s5042_s2 = inlined_call_operand.hbm [shape: bf16[3488,128], index: 2, kind: input, shape index: {}]   ;;  %s5043_s3 = inlined_call_operand.vmem [shape: bf16[32,768], index: 3, kind: input, shape index: {}]   ;;  %s5044_s4 = inlined_call_operand.vmem [shape: f32[1,1536], index: 4, kind: input, shape index: {}]   ;;  %s5045_s5 = inlined_call_operand.hbm [shape: f32[56,128], index: 5, kind: output, shape index: {0}]   ;;  %s5046_s6 = inlined_call_operand.vmem [shape: f32[2,96], index: 6, kind: output, shape index: {1}]  }
   0x1   :  { %13 = vsyncpa [#allocation4], 0  ;;  %s4765_s21 = smov [#allocation2]  }
   0x2   :  { %s23_s22 = sshll.u32 %s4765_s21, 4  ;;  %s24_s22 = int_to_ptr.vmem [resolvable:$true] %s23_s22 }
   0x3   :  { %s4729_s23 = scalar_lea.vmem %s24_s22, 27904  ;;  %p4734_p1 = scmp.lt.s32.totalorder %s24_s22, %s24_s22 }
   0x4   :  { %p4730_p0 = scmp.ne.s32.totalorder %s24_s22, %s4729_s23  ;;  %p4735_p2 = scmp.lt.s32.totalorder %s4729_s23, %s4729_s23 }
   0x6   :  { %p4736_p3 = por %p4735_p2, %p4734_p1 }
   0x8   :  { %p4737_p4 = pnand %p4736_p3, %p4730_p0 }
   0xa   :  { %4740 = shalt.err (!%p4737_p4)
}
   0xb   :  { %s4766_s24 = smov 64   ;;  %s4767_s25 = smov 4  }
   0xc   :  { %29 = dma.hbm_to_vmem [thread:$0]  %s5042_s2, 27904, %s24_s22, [#allocation3], %s4766_s24, %s4766_s24, %s4767_s25  }
   0xd   :  { %4761 = dma.done.wait [#allocation3], 27904  }
   0xe   :  { %4762 = vsyncadd [#allocation3], 4294939392  ;;  %v4768_v0 = vmov 0.0   ;;  %vm4769_vm0 = vmmov 0   ;;  %vm137_vm1 = vcmask 1043456   ;;  %v4448_v3 = vld [vmem:[%s5040_s0 + $0x10] sm:$0xff]  }
   0xf   :  { %4295 = vmatprep.subr.bf16.mxu0 %v4768_v0  ;;  %4303 = vmatprep.mubr.msk.bf16.mxu0 %vm4769_vm0, %v4768_v0  ;;  %v4447_v1 = vld [vmem:[%s5040_s0 + $0x18] ss:$0 sps:$4 sm:$0xff]   ;;  %v4449_v4 = vld [vmem:[%s5040_s0 + $0x8] sm:$0xff]   ;;  %v4450_v5 = vld [vmem:[%s5040_s0] sm:$0xff]   ;;  %vm115_vm2 = vcmask 457728   ;;  %vm660_vm3 = vcmask 228352  }
  0x10   :  { %v139_v2 = vsel %vm137_vm1, %v4447_v1, 0  ;;  %v4458_v6 = vld [vmem:[#allocation2 + $0xb0] sm:$0xff]   ;;  %v4451_v7 = vld [vmem:[#allocation2] sm:$0xff]   ;;  %v4460_v9 = vld [vmem:[#allocation2 + $0xa8] sm:$0xff]   ;;  %vm673_vm4 = vcmask 1045504   ;;  %vm744_vm5 = vcmask 1041408  }
  0x11   :  { %4296 = vmatpush3.bf16.msra.mxu0 %v139_v2  ;;  %v4459_v8 = vld [vmem:[#allocation2 + $0x70] sm:$0xff]   ;;  %3951 = vmatprep.subr.bf16.mxu1 %v4458_v6  ;;  %v4461_v10 = vld [vmem:[#allocation2 + $0x68] sm:$0xff]   ;;  %v4454_v13 = vld [vmem:[#allocation2 + $0x18] sm:$0xff]   ;;  %vm1130_vm6 = vcmask 113664   ;;  %vm1137_vm7 = vcmask 1046528   ;;  %vm1837_vm8 = vcmask 779264  }
  0x12   :  { %4297 = vmatprep.subr.bf16.mxu0 %v4768_v0  ;;  %3952 = vmatpush3.bf16.msra.mxu1 %v4459_v8  ;;  %v4452_v11 = vld [vmem:[#allocation2 + $0x8] sm:$0xff]   ;;  %v4453_v12 = vld [vmem:[#allocation2 + $0x10] sm:$0xff]   ;;  %v4455_v14 = vld [vmem:[#allocation2 + $0x20] sm:$0xff]   ;;  %vm1853_vm9 = vcmask 509352   ;;  %s4770_s20 = smov 48   ;;  %s4771_s23 = smov 75  }
  0x13   :  { %3953 = vmatprep.subr.bf16.mxu1 %v4460_v9  ;;  %v4456_v15 = vld [vmem:[#allocation2 + $0x28] sm:$0xff]   ;;  %v4457_v16 = vld [vmem:[#allocation2 + $0x30] sm:$0xff]   ;;  %v4462_v17 = vld [vmem:[#allocation2 + $0xa0] sm:$0xff]   ;;  %vm1864_vm10 = vcmask 74752   ;;  %vm1916_vm11 = vcmask 1044480   ;;  %vm1912_vm12 = vcmask 80896  }
  0x14   :  { %v4463_v18 = vld [vmem:[#allocation2 + $0x60] sm:$0xff]   ;;  %v4464_v19 = vld [vmem:[#allocation2 + $0x98] sm:$0xff]   ;;  %v4466_v21 = vld [vmem:[#allocation2 + $0x90] sm:$0xff]   ;;  %vm2091_vm13 = vcmask 130048   ;;  %vm2373_vm14 = vcmask 97280  }
  0x15   :  { %4298 = vmatpush3.bf16.msra.mxu0 %v4448_v3  ;;  %v4465_v20 = vld [vmem:[#allocation2 + $0x58] sm:$0xff]   ;;  %v4467_v22 = vld [vmem:[#allocation2 + $0x50] sm:$0xff]   ;;  %v4468_v23 = vld [vmem:[#allocation2 + $0x88] sm:$0xff]  }
  0x16   :  { %4299 = vmatprep.subr.bf16.mxu0 %v4768_v0  ;;  %3954 = vmatpush3.bf16.msra.mxu1 %v4461_v10  ;;  %v4469_v24 = vld [vmem:[#allocation2 + $0x48] sm:$0xff]   ;;  %v4470_v25 = vld [vmem:[#allocation2 + $0x80] sm:$0xff]   ;;  %v4472_v27 = vld [vmem:[#allocation2 + $0x78] sm:$0xff]  }
  0x17   :  { %3955 = vmatprep.subr.bf16.mxu1 %v4462_v17  ;;  %v4471_v26 = vld [vmem:[#allocation2 + $0x40] sm:$0xff]   ;;  %v4473_v28 = vld [vmem:[#allocation2 + $0x38] sm:$0xff]   ;;  %v4474_v29 = vld [vmem:[#allocation2 + $0x130] sm:$0xff]  }
  0x18   :  { %v4475_v49 = vld [vmem:[#allocation2 + $0xf0] sm:$0xff]   ;;  %v4476_v52 = vld [vmem:[#allocation2 + $0x128] sm:$0xff]   ;;  %v4478_v58 = vld [vmem:[#allocation2 + $0x120] sm:$0xff]  }
  0x19   :  { %4300 = vmatpush3.bf16.msra.mxu0 %v4449_v4  ;;  %v4477_v57 = vld [vmem:[#allocation2 + $0xe8] sm:$0xff]   ;;  %v4479_v61 = vld [vmem:[#allocation2 + $0xe0] sm:$0xff]   ;;  %v4480_v63 = vld [vmem:[#allocation2 + $0x118] sm:$0xff]  }
  0x1a   :  { %4301 = vmatprep.subr.bf16.mxu0 %v4768_v0  ;;  %3956 = vmatpush3.bf16.msra.mxu1 %v4463_v18  ;;  %v4481_v3 = vld [vmem:[#allocation2 + $0xd8] sm:$0xff]   ;;  %v4482_v4 = vld [vmem:[#allocation2 + $0x110] sm:$0xff]   ;;  %v4484_v8 = vld [vmem:[#allocation2 + $0x108] sm:$0xff]  }
  0x1b   :  { %3957 = vmatprep.subr.bf16.mxu1 %v4464_v19  ;;  %v4487_v17 = vld [vmem:[#allocation2 + $0xc0] sm:$0xff]   ;;  %v4488_v19 = vld [vmem:[#allocation2 + $0xf8] sm:$0xff]  }
  0x1d   :  { %4302 = vmatpush3.bf16.msra.mxu0 %v4450_v5 }
  0x1e   :  { %3958 = vmatpush3.bf16.msra.mxu1 %v4465_v20 }
  0x1f   :  { %3959 = vmatprep.subr.bf16.mxu1 %v4466_v21 }
  0x20   :  { %4304 = vmatmul.mubr.msk.bf16.vlgmr.msra.gmra.mxu0 %vm115_vm2, %v4451_v7  ;;  %v4483_v7 = vld [vmem:[#allocation2 + $0xd0] sm:$0xff]  }
  0x21   :  { %4307 = vmatprep.mubr.msk.bf16.mxu0 %vm4769_vm0, %v4768_v0 }
  0x22   :  { %3960 = vmatpush3.bf16.msra.mxu1 %v4467_v22 }
  0x23   :  { %3961 = vmatprep.subr.bf16.mxu1 %v4468_v23 }
  0x26   :  { %3962 = vmatpush3.bf16.msra.mxu1 %v4469_v24 }
  0x27   :  { %3963 = vmatprep.subr.bf16.mxu1 %v4470_v25  ;;  %v4489_v25 = vld [vmem:[#allocation2 + $0xb8] sm:$0xff]  }
  0x28   :  { %4308 = vmatmul.mubr.msk.bf16.gmra.mxu0 %vm115_vm2, %v4452_v11  ;;  %v4485_v11 = vld [vmem:[#allocation2 + $0xc8] sm:$0xff]  }
  0x29   :  { %4311 = vmatprep.mubr.msk.bf16.mxu0 %vm4769_vm0, %v4768_v0 }
  0x2a   :  { %3964 = vmatpush3.bf16.msra.mxu1 %v4471_v26 }
  0x2b   :  { %3965 = vmatprep.subr.bf16.mxu1 %v4472_v27 }
  0x2e   :  { %3966 = vmatpush3.bf16.msra.mxu1 %v4473_v28 }
  0x2f   :  { %3979 = vmatprep.subr.bf16.mxu1 %v4474_v29 }
  0x30   :  { %4312 = vmatmul.mubr.msk.bf16.gmra.mxu0 %vm115_vm2, %v4453_v12  ;;  %v4486_v12 = vld [vmem:[#allocation2 + $0x100] sm:$0xff]  }
  0x31   :  { %4315 = vmatprep.mubr.msk.bf16.mxu0 %vm4769_vm0, %v4768_v0 }
  0x38   :  { %4316 = vmatmul.mubr.msk.bf16.gmra.mxu0 %vm115_vm2, %v4454_v13 }
  0x39   :  { %4319 = vmatprep.mubr.msk.bf16.mxu0 %vm4769_vm0, %v4768_v0 }
  0x40   :  { %4320 = vmatmul.mubr.msk.bf16.gmra.mxu0 %vm115_vm2, %v4455_v14 }
  0x41   :  { %4323 = vmatprep.mubr.msk.bf16.mxu0 %vm4769_vm0, %v4768_v0 }
  0x48   :  { %4324 = vmatmul.mubr.msk.bf16.gmra.mxu0 %vm115_vm2, %v4456_v15 }
  0x49   :  { %4327 = vmatprep.mubr.msk.bf16.mxu0 %vm4769_vm0, %v4768_v0 }
  0x50   :  { %4328 = vmatmul.mubr.msk.bf16.gmra.mxu0 %vm115_vm2, %v4457_v16 }
  0xe0   :  { %v175_v30 = vpop.f32.mrf.mxu0 }
  0xe2   :  { %v4305_v31 = vpop.f32.mrf.mxu0 }
  0xe4   :  { %v178_v32 = vpop.f32.mrf.mxu0 }
  0xe5   :  { %v260_v50 = vpack.c.bf16 %v178_v32, %v175_v30  ;;  %v4490_v32 = vld [vmem:[#allocation2 + $0x138] sm:$0xff]  }
  0xe6   :  { %v4306_v33 = vpop.f32.mrf.mxu0  ;;  %4335 = vmatprep.mubr.msk.bf16.mxu0 %vm660_vm3, %v4490_v32  ;;  %v4515_v32 = vld [vmem:[#allocation2 + $0x168] sm:$0xff]  }
  0xe7   :  { %v4494_v33 = vld [vmem:[#allocation2 + $0x1d0] sm:$0xff]  }
  0xe8   :  { %v183_v34 = vpop.f32.mrf.mxu0 }
  0xea   :  { %v4309_v35 = vpop.f32.mrf.mxu0 }
  0xeb   :  { %v4498_v35 = vld [vmem:[#allocation2 + $0x1c8] sm:$0xff]  }
  0xec   :  { %v186_v36 = vpop.f32.mrf.mxu0 }
  0xed   :  { %v234_v42 = vrot.slane %v186_v36, 4  ;;  %v264_v62 = vpack.c.bf16 %v186_v36, %v183_v34  ;;  %v4495_v34 = vld [vmem:[#allocation2 + $0x190] sm:$0xff]   ;;  %v4499_v36 = vld [vmem:[#allocation2 + $0x188] sm:$0xff]  }
  0xee   :  { %v4310_v37 = vpop.f32.mrf.mxu0 }
  0xef   :  { %v4502_v37 = vld [vmem:[#allocation2 + $0x1c0] sm:$0xff]  }
  0xf0   :  { %v191_v38 = vpop.f32.mrf.mxu0 }
  0xf1   :  { %v235_v40 = vrot.slane %v191_v38, 4  ;;  %v4503_v38 = vld [vmem:[#allocation2 + $0x180] sm:$0xff]  }
  0xf2   :  { %v4313_v39 = vpop.f32.mrf.mxu0 }
  0xf3   :  { %v236_v45 = vsel %vm137_vm1, %v234_v42, %v235_v40  ;;  %v4506_v39 = vld [vmem:[#allocation2 + $0x1b8] sm:$0xff]  }
  0xf4   :  { %v194_v41 = vpop.f32.mrf.mxu0 }
  0xf5   :  { %v237_v43 = vrot.slane %v194_v41, 4 }
  0xf6   :  { %v4314_v44 = vpop.f32.mrf.mxu0 }
  0xf7   :  { %v238_v46 = vsel %vm137_vm1, %v235_v40, %v237_v43 }
  0xf8   :  { %v199_v47 = vpop.f32.mrf.mxu0  ;;  %v261_v48 = vpack.c.bf16 %v238_v46, %v236_v45 }
  0xf9   :  { %v239_v51 = vrot.slane %v199_v47, 4 }
  0xfa   :  { %v4317_v53 = vpop.f32.mrf.mxu0  ;;  %563 = vmatprep.mubr.bf16.mxu1 %v261_v48 }
  0xfb   :  { %v240_v54 = vsel %vm137_vm1, %v237_v43, %v239_v51  ;;  %564 = vmatmul.mubr.bf16.vlgmr.msra.gmra.mxu1 %v260_v50 }
  0xfc   :  { %v265_v55 = vpack.c.bf16 %v239_v51, %v240_v54  ;;  %3980 = vmatpush3.bf16.msra.mxu1 %v4475_v49  ;;  %v202_v56 = vpop.f32.mrf.mxu0 }
  0xfd   :  { %3981 = vmatprep.subr.bf16.mxu1 %v4476_v52 }
  0xfe   :  { %v4318_v59 = vpop.f32.mrf.mxu0  ;;  %571 = vmatprep.mubr.bf16.mxu1 %v265_v55 }
 0x100   :  { %3982 = vmatpush3.bf16.msra.mxu1 %v4477_v57  ;;  %v207_v60 = vpop.f32.mrf.mxu0  ;;  %v3675_v57 = vld [vmem:[%s5044_s4] ss:$0 sm:$0xff] }
 0x101   :  { %3983 = vmatprep.subr.bf16.mxu1 %v4478_v58  ;;  %v262_v30 = vpack.c.bf16 %v207_v60, %v202_v56 }
 0x102   :  { %v4321_v1 = vpop.f32.mrf.mxu0 }
 0x103   :  { %572 = vmatmul.mubr.bf16.gmra.mxu1 %v264_v62 }
 0x104   :  { %3984 = vmatpush3.bf16.msra.mxu1 %v4479_v61  ;;  %v210_v2 = vpop.f32.mrf.mxu0 }
 0x105   :  { %3985 = vmatprep.subr.bf16.mxu1 %v4480_v63 }
 0x106   :  { %v4322_v5 = vpop.f32.mrf.mxu0 }
 0x108   :  { %3986 = vmatpush3.bf16.msra.mxu1 %v4481_v3  ;;  %v215_v6 = vpop.f32.mrf.mxu0 }
 0x109   :  { %3987 = vmatprep.subr.bf16.mxu1 %v4482_v4  ;;  %v249_v14 = vrot.slane %v215_v6, 4  ;;  %v266_v31 = vpack.c.bf16 %v215_v6, %v210_v2 }
 0x10a   :  { %v4325_v9 = vpop.f32.mrf.mxu0 }
 0x10c   :  { %3988 = vmatpush3.bf16.msra.mxu1 %v4483_v7  ;;  %v218_v10 = vpop.f32.mrf.mxu0 }
 0x10d   :  { %3989 = vmatprep.subr.bf16.mxu1 %v4484_v8  ;;  %v250_v15 = vrot.slane %v218_v10, 4 }
 0x10e   :  { %v4326_v13 = vpop.f32.mrf.mxu0 }
 0x10f   :  { %v251_v21 = vsel %vm137_vm1, %v249_v14, %v250_v15 }
 0x110   :  { %3990 = vmatpush3.bf16.msra.mxu1 %v4485_v11  ;;  %v223_v16 = vpop.f32.mrf.mxu0 }
 0x111   :  { %v252_v18 = vrot.slane %v223_v16, 4  ;;  %3991 = vmatprep.subr.bf16.mxu1 %v4486_v12 }
 0x112   :  { %v4329_v20 = vpop.f32.mrf.mxu0 }
 0x113   :  { %v253_v22 = vsel %vm137_vm1, %v250_v15, %v252_v18  ;;  %v4497_v20 = vld [vmem:[#allocation2 + $0x210] sm:$0xff]  }
 0x114   :  { %3992 = vmatpush3.bf16.msra.mxu1 %v4487_v17  ;;  %v226_v23 = vpop.f32.mrf.mxu0  ;;  %v263_v24 = vpack.c.bf16 %v253_v22, %v251_v21  ;;  %v4496_v17 = vld [vmem:[#allocation2 + $0x250] sm:$0xff]   ;;  %v4500_v21 = vld [vmem:[#allocation2 + $0x248] sm:$0xff]  }
 0x115   :  { %v254_v26 = vrot.slane %v226_v23, 4  ;;  %3993 = vmatprep.subr.bf16.mxu1 %v4488_v19  ;;  %v4492_v19 = vld [vmem:[#allocation2 + $0x148] sm:$0xff]   ;;  %v4504_v23 = vld [vmem:[#allocation2 + $0x240] sm:$0xff]  }
 0x116   :  { %v4330_v27 = vpop.f32.mrf.mxu0  ;;  %612 = vmatprep.mubr.bf16.mxu1 %v263_v24  ;;  %v4501_v22 = vld [vmem:[#allocation2 + $0x208] sm:$0xff]   ;;  %v4493_v24 = vld [vmem:[#allocation2 + $0x150] ss:$0 sps:$4 sm:$0xff]  }
 0x117   :  { %v255_v28 = vsel %vm137_vm1, %v252_v18, %v254_v26  ;;  %v4491_v18 = vld [vmem:[#allocation2 + $0x140] sm:$0xff]   ;;  %v4510_v27 = vld [vmem:[#allocation2 + $0x1b0] sm:$0xff]  }
 0x118   :  { %v267_v29 = vpack.c.bf16 %v254_v26, %v255_v28  ;;  %3994 = vmatpush3.bf16.msra.mxu1 %v4489_v25  ;;  %v4505_v25 = vld [vmem:[#allocation2 + $0x200] sm:$0xff]   ;;  %v4507_v26 = vld [vmem:[#allocation2 + $0x178] sm:$0xff]   ;;  %v4511_v28 = vld [vmem:[#allocation2 + $0x170] sm:$0xff]  }
 0x119   :  { %4013 = vmatprep.subr.bf16.mxu1 %v4494_v33  ;;  %v4512_v33 = vld [vmem:[#allocation2 + $0x230] sm:$0xff]  }
 0x11b   :  { %613 = vmatmul.mubr.bf16.vlgmr.msra.gmra.mxu1 %v262_v30  ;;  %v4514_v30 = vld [vmem:[#allocation2 + $0x1a8] sm:$0xff]  }
 0x11c   :  { %620 = vmatprep.mubr.bf16.mxu1 %v267_v29  ;;  %4014 = vmatpush3.bf16.msra.mxu1 %v4495_v34  ;;  %v4508_v29 = vld [vmem:[#allocation2 + $0x238] sm:$0xff]   ;;  %v4518_v34 = vld [vmem:[#allocation2 + $0x1a0] sm:$0xff]  }
 0x11d   :  { %4015 = vmatprep.subr.bf16.mxu1 %v4498_v35  ;;  %v4513_v35 = vld [vmem:[#allocation2 + $0x1f0] sm:$0xff]  }
 0x120   :  { %4016 = vmatpush3.bf16.msra.mxu1 %v4499_v36  ;;  %v4519_v36 = vld [vmem:[#allocation2 + $0x160] sm:$0xff]  }
 0x121   :  { %4017 = vmatprep.subr.bf16.mxu1 %v4502_v37  ;;  %v4516_v37 = vld [vmem:[#allocation2 + $0x228] sm:$0xff]  }
 0x123   :  { %621 = vmatmul.mubr.bf16.gmra.mxu1 %v266_v31  ;;  %v4509_v31 = vld [vmem:[#allocation2 + $0x1f8] sm:$0xff]  }
 0x124   :  { %4018 = vmatpush3.bf16.msra.mxu1 %v4503_v38  ;;  %v4522_v38 = vld [vmem:[#allocation2 + $0x198] sm:$0xff]  }
 0x125   :  { %4019 = vmatprep.subr.bf16.mxu1 %v4506_v39  ;;  %v4517_v39 = vld [vmem:[#allocation2 + $0x1e8] sm:$0xff]  }
 0x128   :  { %4020 = vmatpush3.bf16.msra.mxu1 %v4507_v26 }
 0x129   :  { %4021 = vmatprep.subr.bf16.mxu1 %v4510_v27 }
 0x12c   :  { %4022 = vmatpush3.bf16.msra.mxu1 %v4511_v28 }
 0x12d   :  { %4023 = vmatprep.subr.bf16.mxu1 %v4514_v30 }
 0x130   :  { %4024 = vmatpush3.bf16.msra.mxu1 %v4515_v32 }
 0x131   :  { %4025 = vmatprep.subr.bf16.mxu1 %v4518_v34 }
 0x134   :  { %4026 = vmatpush3.bf16.msra.mxu1 %v4519_v36 }
 0x135   :  { %4027 = vmatprep.subr.bf16.mxu1 %v4522_v38  ;;  %v4530_v38 = vld [vmem:[#allocation2 + $0x360] sm:$0xff]  }
 0x1bb   :  { %v3967_v40 = vpop.f32.mrf.mxu1 }
 0x1bd   :  { %v3968_v41 = vpop.f32.mrf.mxu1 }
 0x1be   :  { %v3969_v55 = vadd.f32 %v3968_v41, %v3967_v40  ;;  %v4523_v40 = vld [vmem:[#allocation2 + $0x158] sm:$0xff]   ;;  %v4520_v41 = vld [vmem:[#allocation2 + $0x220] sm:$0xff]  }
 0x1bf   :  { %v3970_v42 = vpop.f32.mrf.mxu1  ;;  %4028 = vmatpush3.bf16.msra.mxu1 %v4523_v40  ;;  %v4527_v40 = vld [vmem:[#allocation2 + $0x260] ss:$0 sps:$4 sm:$0xff]  }
 0x1c0   :  { %v566_v2 = vadd.f32 %v3969_v55, %v3675_v57 }
 0x1c1   :  { %v3971_v43 = vpop.f32.mrf.mxu1 }
 0x1c2   :  { %v3972_v53 = vadd.f32 %v3971_v43, %v3970_v42  ;;  %v4521_v42 = vld [vmem:[#allocation2 + $0x1e0] sm:$0xff]   ;;  %v4524_v43 = vld [vmem:[#allocation2 + $0x218] sm:$0xff]  }
 0x1c3   :  { %v3973_v44 = vpop.f32.mrf.mxu1 }
 0x1c4   :  { %v569_v62 = vadd.f32 %v3972_v53, %v3675_v57 }
 0x1c5   :  { %v3974_v45 = vpop.f32.mrf.mxu1 }
 0x1c6   :  { %v3975_v54 = vadd.f32 %v3974_v45, %v3973_v44  ;;  %v4525_v44 = vld [vmem:[#allocation2 + $0x1d8] sm:$0xff]  }
 0x1c7   :  { %v3976_v46 = vpop.f32.mrf.mxu1 }
 0x1c8   :  { %v574_v63 = vadd.f32 %v3975_v54, %v3675_v57 }
 0x1c9   :  { %v3977_v47 = vpop.f32.mrf.mxu1 }
 0x1ca   :  { %v3978_v58 = vadd.f32 %v3977_v47, %v3976_v46 }
 0x1cc   :  { %v577_v4 = vadd.f32 %v3978_v58, %v3675_v57 }
 0x1db   :  { %v3995_v48 = vpop.f32.mrf.mxu1 }
 0x1dd   :  { %v3996_v49 = vpop.f32.mrf.mxu1 }
 0x1de   :  { %v3997_v1 = vadd.f32 %v3996_v49, %v3995_v48 }
 0x1df   :  { %v3998_v50 = vpop.f32.mrf.mxu1 }
 0x1e0   :  { %v615_v8 = vadd.f32 %v3997_v1, %v566_v2 }
 0x1e1   :  { %v3999_v51 = vpop.f32.mrf.mxu1 }
 0x1e2   :  { %v4000_v59 = vadd.f32 %v3999_v51, %v3998_v50  ;;  %v629_v13 = vmax.f32 %v615_v8, 0.0  ;;  %v4528_v8 = vld [vmem:[#allocation2 + $0x2e0] sm:$0xff]  }
 0x1e3   :  { %v4001_v52 = vpop.f32.mrf.mxu1 }
 0x1e4   :  { %v618_v5 = vadd.f32 %v4000_v59, %v569_v62 }
 0x1e5   :  { %v4002_v56 = vpop.f32.mrf.mxu1 }
 0x1e6   :  { %v4003_v60 = vadd.f32 %v4002_v56, %v4001_v52  ;;  %v630_v10 = vmax.f32 %v618_v5, 0.0 }
 0x1e7   :  { %v4004_v61 = vpop.f32.mrf.mxu1 }
 0x1e8   :  { %v623_v6 = vadd.f32 %v4003_v60, %v574_v63  ;;  %v633_v16 = vpack.c.bf16 %v630_v10, %v629_v13  ;;  %v4532_v10 = vld [vmem:[#allocation2 + $0x2d8] sm:$0xff]   ;;  %v4537_v13 = vld [vmem:[#allocation2 + $0x290] sm:$0xff]  }
 0x1e9   :  { %v4005_v3 = vpop.f32.mrf.mxu1 }
 0x1ea   :  { %v4006_v7 = vadd.f32 %v4005_v3, %v4004_v61  ;;  %v631_v11 = vmax.f32 %v623_v6, 0.0 }
 0x1ec   :  { %v626_v9 = vadd.f32 %v4006_v7, %v577_v4  ;;  %v4526_v7 = vld [vmem:[#allocation2 + $0x258] sm:$0xff]  }
 0x1ee   :  { %v632_v12 = vmax.f32 %v626_v9, 0.0  ;;  %v4529_v9 = vld [vmem:[#allocation2 + $0x2a0] sm:$0xff]  }
 0x1f0   :  { %v634_v14 = vpack.c.bf16 %v632_v12, %v631_v11  ;;  %v4533_v11 = vld [vmem:[#allocation2 + $0x298] sm:$0xff]   ;;  %v4536_v12 = vld [vmem:[#allocation2 + $0x2d0] sm:$0xff]  }
 0x1f2   :  { %4431 = vmatprep.subr.msk.bf16.mxu0 %vm673_vm4, %v634_v14  ;;  %v675_v15 = vsel %vm673_vm4, %v634_v14, 0  ;;  %v4540_v14 = vld [vmem:[#allocation2 + $0x2c8] sm:$0xff]  }
 0x1f3   :  { %4332 = vmatpush3.bf16.msra.mxu0 %v675_v15  ;;  %v4541_v15 = vld [vmem:[#allocation2 + $0x288] sm:$0xff]  }
 0x1f4   :  { %4333 = vmatprep.subr.bf16.mxu0 %v633_v16 }
 0x1f7   :  { %4334 = vmatpush3.bf16.msra.mxu0 %v633_v16  ;;  %v4544_v16 = vld [vmem:[#allocation2 + $0x2c0] sm:$0xff]  }
 0x1f8   :  { %4035 = vmatprep.subr.bf16.mxu0 %v4496_v17  ;;  %v4545_v17 = vld [vmem:[#allocation2 + $0x280] sm:$0xff]  }
 0x1fa   :  { %4336 = vmatmul.mubr.msk.bf16.vlgmr.msra.gmra.mxu0 %vm660_vm3, %v4491_v18 }
 0x1fb   :  { %4339 = vmatprep.mubr.msk.bf16.mxu0 %vm660_vm3, %v4492_v19  ;;  %4036 = vmatpush3.bf16.msra.mxu0 %v4497_v20 }
 0x1fc   :  { %4037 = vmatprep.subr.bf16.mxu0 %v4500_v21 }
 0x1ff   :  { %4038 = vmatpush3.bf16.msra.mxu0 %v4501_v22 }
 0x200   :  { %4039 = vmatprep.subr.bf16.mxu0 %v4504_v23 }
 0x202   :  { %4340 = vmatmul.mubr.msk.bf16.gmra.mxu0 %vm660_vm3, %v4493_v24  ;;  %v3716_v24 = vld [vmem:[%s5044_s4 + $0x1] ss:$0 sm:$0xff] }
 0x203   :  { %4040 = vmatpush3.bf16.msra.mxu0 %v4505_v25 }
 0x204   :  { %4041 = vmatprep.subr.bf16.mxu0 %v4508_v29 }
 0x207   :  { %4042 = vmatpush3.bf16.msra.mxu0 %v4509_v31 }
 0x208   :  { %4043 = vmatprep.subr.bf16.mxu0 %v4512_v33 }
 0x20b   :  { %4044 = vmatpush3.bf16.msra.mxu0 %v4513_v35 }
 0x20c   :  { %4045 = vmatprep.subr.bf16.mxu0 %v4516_v37 }
 0x20f   :  { %4046 = vmatpush3.bf16.msra.mxu0 %v4517_v39 }
 0x210   :  { %4047 = vmatprep.subr.bf16.mxu0 %v4520_v41  ;;  %v4531_v41 = vld [vmem:[#allocation2 + $0x320] sm:$0xff]  }
 0x213   :  { %4048 = vmatpush3.bf16.msra.mxu0 %v4521_v42  ;;  %v4534_v42 = vld [vmem:[#allocation2 + $0x358] sm:$0xff]  }
 0x214   :  { %4049 = vmatprep.subr.bf16.mxu0 %v4524_v43  ;;  %v4535_v43 = vld [vmem:[#allocation2 + $0x318] sm:$0xff]  }
 0x217   :  { %4050 = vmatpush3.bf16.msra.mxu0 %v4525_v44  ;;  %v4538_v44 = vld [vmem:[#allocation2 + $0x350] sm:$0xff]  }
 0x218   :  { %4060 = vmatprep.subr.bf16.mxu0 %v4528_v8 }
 0x2ba   :  { %v4337_v45 = vpop.f32.mrf.mxu0 }
 0x2bb   :  { %v746_v50 = vrot.slane %v4337_v45, 6  ;;  %v4539_v45 = vld [vmem:[#allocation2 + $0x310] sm:$0xff]  }
 0x2bc   :  { %v711_v46 = vpop.f32.mrf.mxu0 }
 0x2be   :  { %v4338_v47 = vpop.f32.mrf.mxu0 }
 0x2bf   :  { %v748_v48 = vrot.slane %v4338_v47, 6  ;;  %v754_v61 = vrot.slane %v4338_v47, 4  ;;  %v4543_v47 = vld [vmem:[#allocation2 + $0x308] sm:$0xff]  }
 0x2c0   :  { %v714_v49 = vpop.f32.mrf.mxu0 }
 0x2c1   :  { %v745_v51 = vrot.slane %v714_v49, 6  ;;  %v749_v54 = vsel %vm744_vm5, %v746_v50, %v748_v48  ;;  %v767_v57 = vpack.c.bf16 %v714_v49, %v711_v46  ;;  %v4542_v46 = vld [vmem:[#allocation2 + $0x348] sm:$0xff]   ;;  %v4546_v48 = vld [vmem:[#allocation2 + $0x340] sm:$0xff]  }
 0x2c2   :  { %v4341_v52 = vpop.f32.mrf.mxu0  ;;  %v4547_v49 = vld [vmem:[#allocation2 + $0x300] sm:$0xff]  }
 0x2c3   :  { %v747_v53 = vsel %vm744_vm5, %v745_v51, %v746_v50  ;;  %v763_v62 = vrot.slane %v4341_v52, 2  ;;  %v4550_v50 = vld [vmem:[#allocation2 + $0x338] sm:$0xff]  }
 0x2c4   :  { %v727_v55 = vpop.f32.mrf.mxu0  ;;  %v768_v56 = vpack.c.bf16 %v749_v54, %v747_v53  ;;  %v4548_v51 = vld [vmem:[#allocation2 + $0x2b8] sm:$0xff]   ;;  %v4554_v54 = vld [vmem:[#allocation2 + $0x330] sm:$0xff]  }
 0x2c5   :  { %v755_v59 = vrot.slane %v727_v55, 4  ;;  %v4551_v52 = vld [vmem:[#allocation2 + $0x2f8] sm:$0xff]   ;;  %v4552_v55 = vld [vmem:[#allocation2 + $0x2b0] sm:$0xff]  }
 0x2c6   :  { %v4342_v58 = vpop.f32.mrf.mxu0  ;;  %1066 = vmatprep.mubr.bf16.mxu1 %v768_v56  ;;  %v4549_v53 = vld [vmem:[#allocation2 + $0x278] sm:$0xff]   ;;  %v4555_v56 = vld [vmem:[#allocation2 + $0x2f0] sm:$0xff]  }
 0x2c7   :  { %1067 = vmatmul.mubr.bf16.vlgmr.msra.gmra.mxu1 %v767_v57  ;;  %v756_v2 = vsel %vm137_vm1, %v754_v61, %v755_v59  ;;  %v4553_v57 = vld [vmem:[#allocation2 + $0x270] sm:$0xff]   ;;  %v4558_v58 = vld [vmem:[#allocation2 + $0x328] sm:$0xff]  }
 0x2c8   :  { %v730_v60 = vpop.f32.mrf.mxu0  ;;  %4345 = vmatprep.mubr.msk.bf16.mxu1 %vm1130_vm6, %v4526_v7  ;;  %v4557_v61 = vld [vmem:[#allocation2 + $0x268] sm:$0xff]  }
 0x2c9   :  { %v757_v63 = vrot.slane %v730_v60, 4  ;;  %v762_v1 = vrot.slane %v730_v60, 2  ;;  %v4559_v60 = vld [vmem:[#allocation2 + $0x2e8] sm:$0xff]  }
 0x2cb   :  { %v758_v3 = vsel %vm137_vm1, %v755_v59, %v757_v63  ;;  %v764_v4 = vsel %vm673_vm4, %v762_v1, %v763_v62  ;;  %v4556_v59 = vld [vmem:[#allocation2 + $0x2a8] sm:$0xff]  }
 0x2cc   :  { %v769_v5 = vpack.c.bf16 %v758_v3, %v756_v2  ;;  %v770_v6 = vpack.c.bf16 %v763_v62, %v764_v4  ;;  %v4560_v62 = vld [vmem:[#allocation2 + $0x688] sm:$0xff]  }
 0x2ce   :  { %1107 = vmatprep.mubr.bf16.mxu0 %v770_v6 }
 0x2cf   :  { %1108 = vmatmul.mubr.bf16.vlgmr.msra.gmra.mxu0 %v769_v5 }
 0x2d0   :  { %4061 = vmatpush3.bf16.msra.mxu0 %v4529_v9 }
 0x2d1   :  { %4062 = vmatprep.subr.bf16.mxu0 %v4532_v10 }
 0x2d4   :  { %4063 = vmatpush3.bf16.msra.mxu0 %v4533_v11 }
 0x2d5   :  { %4064 = vmatprep.subr.bf16.mxu0 %v4536_v12  ;;  %v4564_v12 = vld [vmem:[#allocation2 + $0x6c8] sm:$0xff]  }
 0x2d8   :  { %4065 = vmatpush3.bf16.msra.mxu0 %v4537_v13 }
 0x2d9   :  { %4066 = vmatprep.subr.bf16.mxu0 %v4540_v14 }
 0x2dc   :  { %4067 = vmatpush3.bf16.msra.mxu0 %v4541_v15  ;;  %v4561_v15 = vld [vmem:[#allocation2 + $0x648] sm:$0xff]  }
 0x2dd   :  { %4068 = vmatprep.subr.bf16.mxu0 %v4544_v16 }
 0x2e0   :  { %4069 = vmatpush3.bf16.msra.mxu0 %v4545_v17  ;;  %v4562_v17 = vld [vmem:[#allocation2 + $0x680] sm:$0xff]  }
 0x2e1   :  { %4070 = vmatprep.subr.bf16.mxu0 %v4548_v51 }
 0x2e4   :  { %4071 = vmatpush3.bf16.msra.mxu0 %v4549_v53 }
 0x2e5   :  { %4072 = vmatprep.subr.bf16.mxu0 %v4552_v55 }
 0x2e8   :  { %4073 = vmatpush3.bf16.msra.mxu0 %v4553_v57 }
 0x2e9   :  { %4074 = vmatprep.subr.bf16.mxu0 %v4556_v59 }
 0x2ec   :  { %4075 = vmatpush3.bf16.msra.mxu0 %v4557_v61  ;;  %v3786_v61 = vld [vmem:[%s5044_s4 + $0x3] ss:$0 sm:$0xff] }
 0x2ed   :  { %4104 = vmatprep.subr.bf16.mxu0 %v4560_v62 }
 0x387   :  { %v4029_v18 = vpop.f32.mrf.mxu1 }
 0x389   :  { %v4030_v19 = vpop.f32.mrf.mxu1 }
 0x38a   :  { %v4031_v23 = vadd.f32 %v4030_v19, %v4029_v18  ;;  %v4567_v18 = vld [vmem:[#allocation2 + $0x6c0] sm:$0xff]  }
 0x38b   :  { %v4032_v20 = vpop.f32.mrf.mxu1  ;;  %v4563_v19 = vld [vmem:[#allocation2 + $0x640] sm:$0xff]  }
 0x38c   :  { %v1069_v29 = vadd.f32 %v4031_v23, %v3716_v24  ;;  %v4568_v23 = vld [vmem:[#allocation2 + $0x670] sm:$0xff]  }
 0x38d   :  { %v4033_v22 = vpop.f32.mrf.mxu1 }
 0x38e   :  { %v4034_v27 = vadd.f32 %v4033_v22, %v4032_v20  ;;  %v4565_v20 = vld [vmem:[#allocation2 + $0x678] sm:$0xff]  }
 0x38f   :  { %v4051_v21 = vpop.f32.mrf.mxu0  ;;  %v4566_v22 = vld [vmem:[#allocation2 + $0x638] sm:$0xff]  }
 0x390   :  { %v1072_v32 = vadd.f32 %v4034_v27, %v3716_v24  ;;  %v4569_v24 = vld [vmem:[#allocation2 + $0x630] sm:$0xff]   ;;  %v4576_v27 = vld [vmem:[#allocation2 + $0x6a8] sm:$0xff]  }
 0x391   :  { %v4052_v25 = vpop.f32.mrf.mxu0 }
 0x392   :  { %v4053_v26 = vadd.f32 %v4052_v25, %v4051_v21  ;;  %v4570_v21 = vld [vmem:[#allocation2 + $0x6b8] sm:$0xff]   ;;  %v4573_v25 = vld [vmem:[#allocation2 + $0x6b0] sm:$0xff]  }
 0x393   :  { %v4054_v28 = vpop.f32.mrf.mxu0 }
 0x394   :  { %v1110_v31 = vadd.f32 %v4053_v26, %v1069_v29  ;;  %v4571_v26 = vld [vmem:[#allocation2 + $0x668] sm:$0xff]   ;;  %v4574_v29 = vld [vmem:[#allocation2 + $0x660] sm:$0xff]  }
 0x395   :  { %v4055_v30 = vpop.f32.mrf.mxu0 }
 0x396   :  { %v4056_v33 = vadd.f32 %v4055_v30, %v4054_v28  ;;  %v1116_v35 = vmax.f32 %v1110_v31, 0.0  ;;  %v4572_v28 = vld [vmem:[#allocation2 + $0x628] sm:$0xff]   ;;  %v4579_v30 = vld [vmem:[#allocation2 + $0x6a0] sm:$0xff]  }
 0x397   :  { %v4575_v31 = vld [vmem:[#allocation2 + $0x620] sm:$0xff]  }
 0x398   :  { %v1113_v34 = vadd.f32 %v4056_v33, %v1072_v32  ;;  %v4577_v32 = vld [vmem:[#allocation2 + $0x658] sm:$0xff]  }
 0x399   :  { %v4582_v33 = vld [vmem:[#allocation2 + $0x698] sm:$0xff]  }
 0x39a   :  { %v1117_v36 = vmax.f32 %v1113_v34, 0.0  ;;  %v4578_v34 = vld [vmem:[#allocation2 + $0x618] sm:$0xff]  }
 0x39c   :  { %v1118_v37 = vpack.c.bf16 %v1117_v36, %v1116_v35  ;;  %v4580_v35 = vld [vmem:[#allocation2 + $0x650] sm:$0xff]  }
 0x39d   :  { %v4583_v36 = vld [vmem:[#allocation2 + $0x690] sm:$0xff]  }
 0x39e   :  { %4432 = vmatprep.subr.msk.bf16.mxu1 %vm1137_vm7, %v1118_v37  ;;  %v1139_v39 = vsel %vm1137_vm7, %v1118_v37, 0  ;;  %v4581_v37 = vld [vmem:[#allocation2 + $0x610] sm:$0xff]  }
 0x39f   :  { %4344 = vmatpush3.bf16.msra.mxu1 %v1139_v39 }
 0x3a0   :  { %4082 = vmatprep.subr.bf16.mxu1 %v4530_v38 }
 0x3a2   :  { %4346 = vmatmul.mubr.msk.bf16.vlgmr.msra.gmra.mxu1 %vm1130_vm6, %v4527_v40 }
 0x3a3   :  { %4083 = vmatpush3.bf16.msra.mxu1 %v4531_v41  ;;  %v3753_v41 = vld [vmem:[%s5044_s4 + $0x2] ss:$0 sm:$0xff] }
 0x3a4   :  { %4084 = vmatprep.subr.bf16.mxu1 %v4534_v42 }
 0x3a7   :  { %4085 = vmatpush3.bf16.msra.mxu1 %v4535_v43 }
 0x3a8   :  { %4086 = vmatprep.subr.bf16.mxu1 %v4538_v44 }
 0x3ab   :  { %4087 = vmatpush3.bf16.msra.mxu1 %v4539_v45 }
 0x3ac   :  { %4088 = vmatprep.subr.bf16.mxu1 %v4542_v46 }
 0x3af   :  { %4089 = vmatpush3.bf16.msra.mxu1 %v4543_v47 }
 0x3b0   :  { %4090 = vmatprep.subr.bf16.mxu1 %v4546_v48 }
 0x3b3   :  { %4091 = vmatpush3.bf16.msra.mxu1 %v4547_v49 }
 0x3b4   :  { %4092 = vmatprep.subr.bf16.mxu1 %v4550_v50 }
 0x3b7   :  { %4093 = vmatpush3.bf16.msra.mxu1 %v4551_v52 }
 0x3b8   :  { %4094 = vmatprep.subr.bf16.mxu1 %v4554_v54 }
 0x3bb   :  { %4095 = vmatpush3.bf16.msra.mxu1 %v4555_v56 }
 0x3bc   :  { %4096 = vmatprep.subr.bf16.mxu1 %v4558_v58 }
 0x3bf   :  { %4097 = vmatpush3.bf16.msra.mxu1 %v4559_v60 }
 0x3c0   :  { %4349 = vmatprep.subr.bf16.mxu1 %v4768_v0 }
 0x462   :  { %v4347_v63 = vpop.f32.mrf.mxu1 }
 0x463   :  { %v1200_v1 = vrot.slane %v4347_v63, 2  ;;  %v1197_v6 = vrot.slane %v4347_v63, 4 }
 0x464   :  { %v1175_v2 = vpop.f32.mrf.mxu1 }
 0x465   :  { %v1205_v3 = vpack.c.bf16 %v1200_v1, %v1200_v1  ;;  %v1191_v7 = vrot.slane %v1175_v2, 6  ;;  %v1202_v16 = vpack.c.bf16 %v1175_v2, %v1175_v2 }
 0x466   :  { %v4348_v4 = vpop.f32.mrf.mxu1 }
 0x467   :  { %1541 = vmatprep.mubr.bf16.mxu1 %v1205_v3 }
 0x468   :  { %v1178_v5 = vpop.f32.mrf.mxu1 }
 0x469   :  { %v1192_v8 = vrot.slane %v1178_v5, 6  ;;  %v1196_v9 = vrot.slane %v1178_v5, 4 }
 0x46b   :  { %v1198_v10 = vsel %vm137_vm1, %v1196_v9, %v1197_v6  ;;  %v1193_v11 = vsel %vm744_vm5, %v1191_v7, %v1192_v8 }
 0x46c   :  { %v1204_v13 = vpack.c.bf16 %v1198_v10, %v1198_v10  ;;  %v1203_v14 = vpack.c.bf16 %v1193_v11, %v1193_v11 }
 0x46e   :  { %1501 = vmatprep.mubr.bf16.mxu0 %v1203_v14  ;;  %1542 = vmatmul.mubr.bf16.vlgmr.msra.gmra.mxu1 %v1204_v13  ;;  %v1839_v14 = vld [vmem:[%s5041_s1] sm:$0x3] }
 0x46f   :  { %1502 = vmatmul.mubr.bf16.vlgmr.msra.gmra.mxu0 %v1202_v16  ;;  %4350 = vmatpush3.bf16.msra.mxu1 %v4564_v12 }
 0x470   :  { %4105 = vmatpush3.bf16.msra.mxu0 %v4561_v15  ;;  %4351 = vmatprep.subr.bf16.mxu1 %v4768_v0 }
 0x471   :  { %4106 = vmatprep.subr.bf16.mxu0 %v4562_v17  ;;  %4365 = vmatprep.mubr.msk.bf16.mxu1 %vm4769_vm0, %v4768_v0 }
 0x473   :  { %4352 = vmatpush3.bf16.msra.mxu1 %v4567_v18 }
 0x474   :  { %4107 = vmatpush3.bf16.msra.mxu0 %v4563_v19  ;;  %4353 = vmatprep.subr.bf16.mxu1 %v4768_v0  ;;  %v4772_v19 = vmov 63  }
 0x475   :  { %4108 = vmatprep.subr.bf16.mxu0 %v4565_v20  ;;  %4446 = vset.pattern.permute.xlu0 %v4772_v19  ;;  %v4584_v20 = vld [vmem:[%s5043_s3 + $0x34] ss:$24 sps:$4 sm:$0x1f]  }
 0x477   :  { %4354 = vmatpush3.bf16.msra.mxu1 %v4570_v21  ;;  %v4586_v21 = vld [vmem:[%s5043_s3 + $0x3c] ss:$24 sps:$4 sm:$0x1f]  }
 0x478   :  { %4109 = vmatpush3.bf16.msra.mxu0 %v4566_v22  ;;  %4355 = vmatprep.subr.bf16.mxu1 %v4768_v0  ;;  %v4588_v22 = vld [vmem:[%s5043_s3 + $0x30] ss:$24 sps:$4 sm:$0x1f]  }
 0x479   :  { %4110 = vmatprep.subr.bf16.mxu0 %v4568_v23  ;;  %v4773_v23 = vmov 0  }
 0x47b   :  { %4356 = vmatpush3.bf16.msra.mxu1 %v4573_v25  ;;  %v1918_v25 = vsel %vm1916_vm11, %v4588_v22, 0 }
 0x47c   :  { %4111 = vmatpush3.bf16.msra.mxu0 %v4569_v24  ;;  %4357 = vmatprep.subr.bf16.mxu1 %v4768_v0  ;;  %v4589_v24 = vld [vmem:[%s5043_s3 + $0x38] ss:$24 sps:$4 sm:$0x1f]  }
 0x47d   :  { %4112 = vmatprep.subr.bf16.mxu0 %v4571_v26  ;;  %v1924_v26 = vsel %vm1916_vm11, %v4589_v24, 0 }
 0x47f   :  { %4358 = vmatpush3.bf16.msra.mxu1 %v4576_v27 }
 0x480   :  { %4113 = vmatpush3.bf16.msra.mxu0 %v4572_v28  ;;  %4359 = vmatprep.subr.bf16.mxu1 %v4768_v0  ;;  %v4590_v28 = vld [vmem:[%s5043_s3 + $0x44] ss:$24 sps:$4 sm:$0x1f]  }
 0x481   :  { %4114 = vmatprep.subr.bf16.mxu0 %v4574_v29  ;;  %v4594_v29 = vld [vmem:[%s5043_s3 + $0x4] ss:$24 sps:$4 sm:$0xff]  }
 0x483   :  { %4360 = vmatpush3.bf16.msra.mxu1 %v4579_v30 }
 0x484   :  { %4115 = vmatpush3.bf16.msra.mxu0 %v4575_v31  ;;  %4361 = vmatprep.subr.bf16.mxu1 %v4768_v0 }
 0x485   :  { %4116 = vmatprep.subr.bf16.mxu0 %v4577_v32 }
 0x487   :  { %4362 = vmatpush3.bf16.msra.mxu1 %v4582_v33 }
 0x488   :  { %4117 = vmatpush3.bf16.msra.mxu0 %v4578_v34  ;;  %4363 = vmatprep.subr.bf16.mxu1 %v4768_v0 }
 0x489   :  { %4118 = vmatprep.subr.bf16.mxu0 %v4580_v35 }
 0x48b   :  { %4364 = vmatpush3.bf16.msra.mxu1 %v4583_v36  ;;  %v4595_v36 = vld [vmem:[%s5043_s3 + $0x40] ss:$24 sps:$4 sm:$0x1f]  }
 0x48c   :  { %4119 = vmatpush3.bf16.msra.mxu0 %v4581_v37  ;;  %3819 = vmatprep.subr.msk.bf16.mxu1 %vm1916_vm11, %v4586_v21  ;;  %v4592_v37 = vld [vmem:[%s5043_s3] ss:$24 sps:$4 sm:$0xff]  }
 0x48d   :  { %3817 = vmatprep.subr.msk.bf16.mxu0 %vm1916_vm11, %v4584_v20 }
 0x52e   :  { %v4098_v38 = vpop.f32.mrf.mxu1 }
 0x52f   :  { %v4076_v39 = vpop.f32.mrf.mxu0 }
 0x530   :  { %v4099_v40 = vpop.f32.mrf.mxu1 }
 0x531   :  { %v4077_v42 = vpop.f32.mrf.mxu0  ;;  %v4100_v47 = vadd.f32 %v4099_v40, %v4098_v38  ;;  %v1930_v38 = vsel %vm1916_vm11, %v4595_v36, 0  ;;  %v4598_v40 = vld [vmem:[%s5043_s3 + $0xc] ss:$24 sps:$4 sm:$0xff]  }
 0x532   :  { %v4078_v43 = vadd.f32 %v4077_v42, %v4076_v39  ;;  %v4101_v44 = vpop.f32.mrf.mxu1  ;;  %v4596_v42 = vld [vmem:[%s5043_s3 + $0x8] ss:$24 sps:$4 sm:$0xff]  }
 0x533   :  { %v4079_v45 = vpop.f32.mrf.mxu0 }
 0x534   :  { %v1504_v46 = vadd.f32 %v4078_v43, %v3753_v41  ;;  %v4102_v48 = vpop.f32.mrf.mxu1  ;;  %v4601_v41 = vld [vmem:[%s5043_s3 + $0x14] ss:$24 sps:$4 sm:$0xff]   ;;  %v4599_v43 = vld [vmem:[%s5043_s3 + $0x10] ss:$24 sps:$4 sm:$0xff]   ;;  %v2232_v45 = vlaneseq }
 0x535   :  { %v4080_v49 = vpop.f32.mrf.mxu0 }
 0x536   :  { %v1544_v50 = vadd.f32 %v4100_v47, %v1504_v46  ;;  %v4956_v46 = vshrl.u32 %v2232_v45, 7  ;;  %v2218_v49 = vld [vmem:[%s5043_s3 + $0x48] sm:$0x22] }
 0x538   :  { %v1549_v51 = vmax.f32 %v1544_v50, 0.0  ;;  %v2271_v20 = vsub.s32 0, %v4956_v46  ;;  %v2283_v24 = vsub.s32 3, %v4956_v46 }
 0x53a   :  { %v1553_v52 = vrot.slane %v1549_v51, 4  ;;  %v1551_v53 = vrot.slane %v1549_v51, 2  ;;  %v1555_v56 = vpack.c.bf16 %v1549_v51, %v1549_v51 }
 0x53c   :  { %v1556_v54 = vpack.c.bf16 %v1551_v53, %v1551_v53  ;;  %v1557_v55 = vpack.c.bf16 %v1553_v52, %v1553_v52  ;;  %v4962_v52 = vsub.s32 2, %v4956_v46  ;;  %v2222_v53 = vunpack.c.h.bf16 %v2218_v49 }
 0x53e   :  { %1789 = vmatprep.mubr.bf16.mxu0 %v1556_v54  ;;  %4366 = vmatmul.mubr.bf16.vlgmr.msra.gmra.mxu1 %v1557_v55 }
 0x53f   :  { %1790 = vmatmul.mubr.bf16.vlgmr.msra.gmra.mxu0 %v1555_v56  ;;  %2008 = vmatprep.mubr.bf16.mxu1 %v4773_v23 }
 0x540   :  { %1967 = vmatprep.mubr.bf16.mxu0 %v4773_v23  ;;  %1950 = vmatpush1.bf16.msra.mxu0 %v1918_v25 }
 0x541   :  { %1991 = vmatpush1.bf16.msra.mxu1 %v1924_v26  ;;  %3821 = vmatprep.subr.msk.bf16.mxu0 %vm1916_vm11, %v4590_v28 }
 0x542   :  { %2109 = vmatprep.subr.bf16.mxu1 %v4594_v29 }
 0x5fe   :  { %v1831_v57 = vpop.f32.mrf.mxu1 }
 0x5ff   :  { %v4120_v58 = vpop.f32.mrf.mxu0 }
 0x600   :  { %v4367_v59 = vpop.f32.mrf.mxu1 }
 0x601   :  { %v4121_v60 = vpop.f32.mrf.mxu0  ;;  %v2220_v59 = vld [vmem:[%s5043_s3 + $0x58] sm:$0x22] }
 0x602   :  { %v4122_v62 = vadd.f32 %v4121_v60, %v4120_v58  ;;  %v1834_v63 = vpop.f32.mrf.mxu1  ;;  %v2219_v58 = vld [vmem:[%s5043_s3 + $0x50] sm:$0x22] }
 0x603   :  { %v4123_v1 = vpop.f32.mrf.mxu0 }
 0x604   :  { %v1792_v2 = vadd.f32 %v4122_v62, %v3786_v61  ;;  %v4368_v3 = vpop.f32.mrf.mxu1  ;;  %v2239_v61 = vrot.slane %v2222_v53, %v4962_v52  ;;  %v2221_v1 = vunpack.c.l.bf16 %v2218_v49 }
 0x605   :  { %v4124_v4 = vpop.f32.mrf.mxu0  ;;  %v2223_v3 = vunpack.c.l.bf16 %v2219_v58 }
 0x606   :  { %v1832_v5 = vadd.f32 %v1831_v57, %v1792_v2  ;;  %v2275_v2 = vsub.s32 1, %v4956_v46  ;;  %v2225_v4 = vunpack.c.l.bf16 %v2220_v59 }
 0x608   :  { %1838 = vst.msk [vmem:[%s5046_s6] sm:$0x3] %vm1837_vm8, %v1832_v5  ;;  %v1854_v6 = vsel %vm1853_vm9, %v1832_v5, -inf  ;;  %v1840_v7 = vmul.f32 0.5, %v1832_v5 }
 0x609   :  { %1855 = vmax.xlane.f32.xlu0 %v1854_v6 }
 0x60a   :  { %v1841_v8 = vmul.f32 1.442695, %v1840_v7  ;;  %v1870_v7 = vld [vmem:[%s5044_s4 + $0x6] sm:$0x3f] }
 0x60b   :  { %v2272_v36 = vrot.slane %v1870_v7, %v2271_v20  ;;  %v4612_v20 = vld [vmem:[#allocation2 + $0x3d0] sm:$0xff]  }
 0x60c   :  { %4687 = vpow2.f32 %v1841_v8 }
 0x619   :  { %v4688_v9 = vpop.eup %4687 }
 0x61a   :  { %1844 = vrot.lane.b32.xlu1 %v4688_v9, %s4770_s20 }
 0x68c   :  { %v1845_v15 = vpop.permute.xlu1 %1844 }
 0x68d   :  { %v1847_v16 = vmul.f32 %v1845_v15, %v1839_v14  ;;  %v2226_v15 = vunpack.c.h.bf16 %v2220_v59 }
 0x68f   :  { %v2255_v29 = vrot.slane %v2226_v15, %v4962_v52  ;;  %v4607_v15 = vld [vmem:[#allocation2 + $0x390] sm:$0xff]  }
 0x692   :  { %v1856_v10 = vpop.xlane.xlu0 %1855 }
 0x693   :  { %v1857_v11 = vsub.f32 %v1832_v5, %v1856_v10  ;;  %v2224_v10 = vunpack.c.h.bf16 %v2219_v58 }
 0x695   :  { %v1858_v12 = vmul.f32 1.442695, %v1857_v11  ;;  %v2235_v11 = vrot.slane %v2221_v1, %v4962_v52 }
 0x697   :  { %4689 = vpow2.f32 %v1858_v12  ;;  %v2276_v12 = vrot.slane %v1870_v7, %v2275_v2 }
 0x6a4   :  { %v4690_v13 = vpop.eup %4689 }
 0x6a5   :  { %1861 = vrot.lane.b32.xlu0 %v4690_v13, %s4771_s23 }
 0x6a9   :  { %1849 = vrot.lane.b32.xlu0 %v1847_v16, %s4766_s24 }
 0x717   :  { %v1862_v17 = vpop.permute.xlu0 %1861 }
 0x718   :  { %v1865_v18 = vsel %vm1864_vm10, %v1862_v17, 0.0  ;;  %v2243_v17 = vrot.slane %v2223_v3, %v4962_v52 }
 0x719   :  { %1866 = vadd.xlane.f32.xlu1 %v1865_v18  ;;  %v2251_v18 = vrot.slane %v2225_v4, %v4962_v52 }
 0x71b   :  { %v1850_v31 = vpop.permute.xlu0 %1849 }
 0x71c   :  { %v1852_v33 = vadd.f32 %v1850_v31, %v1832_v5 }
 0x71e   :  { %v1871_v35 = vpack.c.bf16 %v1852_v33, %v1852_v33  ;;  %v2280_v33 = vrot.slane %v1870_v7, %v4962_v52 }
 0x7a2   :  { %v1867_v27 = vpop.xlane.xlu1 %1866 }
 0x7a3   :  { %4691 = vrcp.f32 %v1867_v27 }
 0x7b0   :  { %v4692_v30 = vpop.eup %4691 }
 0x7b1   :  { %v1869_v32 = vmul.f32 %v4692_v30, %v4690_v13  ;;  %v2291_v30 = vsub.s32 5, %v4956_v46 }
 0x7b3   :  { %v1878_v34 = vpack.c.bf16 %v1869_v32, %v1869_v32 }
 0x7b5   :  { %1886 = vrot.lane.b32.xlu0 %v1878_v34, %s4771_s23 }
 0x7b9   :  { %2059 = vrot.lane.b32.xlu0 %v1871_v35, %s4766_s24 }
 0x7bd   :  { %2229 = vperm.xlu0 %4446, %v1832_v5  }
 0x827   :  { %v1887_v39 = vpop.permute.xlu0 %1886 }
 0x828   :  { %3818 = vmatmul.mubr.msk.bf16.vlgmr.msra.gmra.mxu0 %vm1912_vm12, %v1887_v39  ;;  %3820 = vmatmul.mubr.msk.bf16.vlgmr.msra.gmra.mxu1 %vm1912_vm12, %v1887_v39 }
 0x829   :  { %2032 = vmatpush1.bf16.msra.mxu0 %v1930_v38  ;;  %2110 = vmatpush1.bf16.msra.mxu1 %v4592_v37  ;;  %v2287_v38 = vsub.s32 4, %v4956_v46 }
 0x82a   :  { %2049 = vmatprep.mubr.bf16.mxu0 %v4773_v23  ;;  %2127 = vmatprep.mubr.bf16.mxu1 %v4773_v23 }
 0x82b   :  { %2150 = vmatprep.subr.bf16.mxu0 %v4598_v40  ;;  %2191 = vmatprep.subr.bf16.mxu1 %v4601_v41  ;;  %v2060_v44 = vpop.permute.xlu0 %2059 }
 0x830   :  { %3822 = vmatmul.mubr.msk.bf16.vlgmr.msra.gmra.mxu0 %vm1912_vm12, %v1887_v39  ;;  %3829 = vmatmul.mubr.msk.bf16.vlgmr.msra.gmra.mxu1 %vm2091_vm13, %v2060_v44 }
 0x831   :  { %2151 = vmatpush1.bf16.msra.mxu0 %v4596_v42  ;;  %2192 = vmatpush1.bf16.msra.mxu1 %v4599_v43 }
 0x832   :  { %2168 = vmatprep.mubr.bf16.mxu0 %v4773_v23  ;;  %2209 = vmatprep.mubr.bf16.mxu1 %v4773_v23  ;;  %v2247_v23 = vrot.slane %v2224_v10, %v4962_v52  ;;  %v4602_v10 = vld [vmem:[#allocation2 + $0x368] sm:$0xff]  }
 0x833   :  { %4369 = vmatprep.subr.bf16.mxu0 %v4768_v0 }
 0x838   :  { %3830 = vmatmul.mubr.msk.bf16.vlgmr.msra.gmra.mxu0 %vm2091_vm13, %v2060_v44  ;;  %3831 = vmatmul.mubr.msk.bf16.vlgmr.msra.gmra.mxu1 %vm2091_vm13, %v2060_v44  ;;  %v2230_v60 = vpop.permute.xlu0 %2229  ;;  %v2284_v44 = vrot.slane %v1870_v7, %v2283_v24  ;;  %v4616_v24 = vld [vmem:[#allocation2 + $0x3c0] sm:$0xff]  }
 0x839   :  { %4371 = vmatprep.mubr.msk.bf16.mxu0 %vm4769_vm0, %v4768_v0  ;;  %v2257_v9 = vmul.f32 %v2239_v61, %v2230_v60  ;;  %v2256_v25 = vmul.f32 %v2235_v11, %v2230_v60  ;;  %v2258_v32 = vmul.f32 %v2243_v17, %v2230_v60  ;;  %v2260_v34 = vmul.f32 %v2251_v18, %v2230_v60  ;;  %v4603_v11 = vld [vmem:[#allocation2 + $0x370] sm:$0xff]   ;;  %v4609_v17 = vld [vmem:[#allocation2 + $0x418] sm:$0xff]  }
 0x83a   :  { %v2259_v43 = vmul.f32 %v2247_v23, %v2230_v60  ;;  %v2261_v49 = vmul.f32 %v2255_v29, %v2230_v60  ;;  %v4610_v18 = vld [vmem:[#allocation2 + $0x3d8] sm:$0xff]   ;;  %4143 = vmatprep.subr.bf16.mxu1 %v4609_v17  ;;  %v4615_v23 = vld [vmem:[#allocation2 + $0x400] sm:$0xff]   ;;  %v4626_v29 = vld [vmem:[#allocation2 + $0x3a8] sm:$0xff]  }
 0x83b   :  { %4144 = vmatpush3.bf16.msra.mxu1 %v4610_v18 }
 0x8e8   :  { %v1969_v47 = vpop.f32.mrf.mxu0  ;;  %v2010_v48 = vpop.f32.mrf.mxu1 }
 0x8ea   :  { %v1971_v50 = vpop.f32.mrf.mxu0  ;;  %v2012_v51 = vpop.f32.mrf.mxu1 }
 0x8ec   :  { %v1973_v54 = vpop.f32.mrf.mxu0  ;;  %v2014_v55 = vpop.f32.mrf.mxu1 }
 0x8ee   :  { %v1974_v56 = vpop.f32.mrf.mxu0  ;;  %v2015_v57 = vpop.f32.mrf.mxu1 }
 0x8ef   :  { %v2288_v57 = vrot.slane %v1870_v7, %v2287_v38  ;;  %v4631_v38 = vld [vmem:[#allocation2 + $0x480] sm:$0xff]  }
 0x8f0   :  { %v2051_v62 = vpop.f32.mrf.mxu0  ;;  %v2129_v63 = vpop.f32.mrf.mxu1 }
 0x8f1   :  { %v2130_v19 = vadd.f32 %v2129_v63, %v1969_v47 }
 0x8f2   :  { %v2053_v5 = vpop.f32.mrf.mxu0  ;;  %v2131_v6 = vpop.f32.mrf.mxu1 }
 0x8f3   :  { %v2132_v8 = vadd.f32 %v2131_v6, %v1971_v50  ;;  %v2262_v35 = vadd.f32 %v2256_v25, %v2130_v19  ;;  %v2292_v50 = vrot.slane %v1870_v7, %v2291_v30  ;;  %v4611_v19 = vld [vmem:[#allocation2 + $0x410] sm:$0xff]   ;;  %v4618_v25 = vld [vmem:[#allocation2 + $0x3b8] sm:$0xff]  }
 0x8f4   :  { %v2055_v13 = vpop.f32.mrf.mxu0  ;;  %v2133_v14 = vpop.f32.mrf.mxu1  ;;  %4145 = vmatprep.subr.bf16.mxu1 %v4611_v19  ;;  %v4619_v30 = vld [vmem:[#allocation2 + $0x498] sm:$0xff]  }
 0x8f5   :  { %v2263_v16 = vadd.f32 %v2257_v9, %v2132_v8  ;;  %v2299_v55 = vadd.f32 %v2272_v36, %v2262_v35  ;;  %v4605_v13 = vld [vmem:[#allocation2 + $0x380] sm:$0xff]   ;;  %v4606_v14 = vld [vmem:[#allocation2 + $0x388] sm:$0xff]   ;;  %4146 = vmatpush3.bf16.msra.mxu1 %v4612_v20  ;;  %v4624_v35 = vld [vmem:[#allocation2 + $0x450] sm:$0xff]  }
 0x8f6   :  { %v2056_v21 = vpop.f32.mrf.mxu0  ;;  %v2134_v22 = vpop.f32.mrf.mxu1  ;;  %v4627_v36 = vld [vmem:[#allocation2 + $0x488] sm:$0xff]  }
 0x8f7   :  { %v2300_v26 = vadd.f32 %v2276_v12, %v2263_v16  ;;  %v4604_v12 = vld [vmem:[#allocation2 + $0x378] sm:$0xff]   ;;  %v4613_v21 = vld [vmem:[#allocation2 + $0x408] sm:$0xff]  }
 0x8f8   :  { %v2170_v27 = vpop.f32.mrf.mxu0  ;;  %v2211_v28 = vpop.f32.mrf.mxu1  ;;  %v4608_v16 = vld [vmem:[#allocation2 + $0x398] sm:$0xff]   ;;  %v4614_v22 = vld [vmem:[#allocation2 + $0x3c8] sm:$0xff]   ;;  %4147 = vmatprep.subr.bf16.mxu1 %v4613_v21 }
 0x8f9   :  { %v2171_v31 = vadd.f32 %v2170_v27, %v2010_v48  ;;  %v2212_v37 = vadd.f32 %v2211_v28, %v2051_v62  ;;  %v2306_v45 = vrot.slane %v2300_v26, 6  ;;  %4148 = vmatpush3.bf16.msra.mxu1 %v4614_v22  ;;  %v4621_v26 = vld [vmem:[#allocation2 + $0x3f0] sm:$0xff]   ;;  %v4625_v28 = vld [vmem:[#allocation2 + $0x3e8] sm:$0xff]  }
 0x8fa   :  { %v2172_v39 = vpop.f32.mrf.mxu0  ;;  %v2213_v40 = vpop.f32.mrf.mxu1  ;;  %4149 = vmatprep.subr.bf16.mxu1 %v4615_v23  ;;  %v4622_v27 = vld [vmem:[#allocation2 + $0x3b0] sm:$0xff]  }
 0x8fb   :  { %v2264_v41 = vadd.f32 %v2258_v32, %v2171_v31  ;;  %v2173_v42 = vadd.f32 %v2172_v39, %v2012_v51  ;;  %v2214_v47 = vadd.f32 %v2213_v40, %v2053_v5  ;;  %v2266_v56 = vadd.f32 %v2260_v34, %v2212_v37  ;;  %v4629_v31 = vld [vmem:[#allocation2 + $0x3e0] sm:$0xff]   ;;  %v4620_v32 = vld [vmem:[#allocation2 + $0x458] sm:$0xff]   ;;  %v4623_v34 = vld [vmem:[#allocation2 + $0x490] sm:$0xff]  }
 0x8fc   :  { %v2174_v48 = vpop.f32.mrf.mxu0  ;;  %v2215_v53 = vpop.f32.mrf.mxu1  ;;  %v2317_v51 = vsel %vm744_vm5, %v2299_v55, %v2306_v45  ;;  %v4628_v37 = vld [vmem:[#allocation2 + $0x448] sm:$0xff]   ;;  %v4632_v39 = vld [vmem:[#allocation2 + $0x440] sm:$0xff]   ;;  %v4633_v40 = vld [vmem:[#allocation2 + $0x478] sm:$0xff]  }
 0x8fd   :  { %v2301_v54 = vadd.f32 %v2280_v33, %v2264_v41  ;;  %v2265_v52 = vadd.f32 %v2259_v43, %v2173_v42  ;;  %v2267_v58 = vadd.f32 %v2261_v49, %v2214_v47  ;;  %v2303_v60 = vadd.f32 %v2288_v57, %v2266_v56  ;;  %4150 = vmatpush3.bf16.msra.mxu1 %v4616_v24  ;;  %v4630_v33 = vld [vmem:[#allocation2 + $0x3a0] sm:$0xff]   ;;  %v4634_v41 = vld [vmem:[#allocation2 + $0x438] sm:$0xff]   ;;  %v4635_v42 = vld [vmem:[#allocation2 + $0x470] sm:$0xff]  }
 0x8fe   :  { %v2175_v59 = vpop.f32.mrf.mxu0  ;;  %v2216_v46 = vpop.f32.mrf.mxu1  ;;  %v4636_v43 = vld [vmem:[#allocation2 + $0x430] sm:$0xff]   ;;  %v4638_v45 = vld [vmem:[#allocation2 + $0x428] sm:$0xff]   ;;  %v4639_v47 = vld [vmem:[#allocation2 + $0x460] sm:$0xff]  }
 0x8ff   :  { %v2309_v61 = vrot.slane %v2301_v54, 4  ;;  %v2302_v62 = vadd.f32 %v2284_v44, %v2265_v52  ;;  %v2304_v63 = vadd.f32 %v2292_v50, %v2267_v58  ;;  %v4637_v44 = vld [vmem:[#allocation2 + $0x468] sm:$0xff]   ;;  %v4640_v49 = vld [vmem:[#allocation2 + $0x420] sm:$0xff]  }
 0x901   :  { %v2318_v1 = vsel %vm137_vm1, %v2317_v51, %v2309_v61  ;;  %v2312_v2 = vrot.slane %v2302_v62, 2  ;;  %v2315_v3 = vrot.slane %v2304_v63, 6 }
 0x903   :  { %v2319_v4 = vsel %vm673_vm4, %v2318_v1, %v2312_v2  ;;  %v2320_v5 = vsel %vm744_vm5, %v2303_v60, %v2315_v3 }
 0x904   :  { %v2321_v6 = vmax.f32 %v2319_v4, 0.0  ;;  %v2322_v8 = vmax.f32 %v2320_v5, 0.0 }
 0x906   :  { %v2323_v7 = vpack.c.bf16 %v2322_v8, %v2321_v6 }
 0x908   :  { %v2396_v9 = vsel %vm673_vm4, %v2323_v7, 0 }
 0x909   :  { %4370 = vmatpush3.bf16.msra.mxu0 %v2396_v9 }
 0x90a   :  { %4171 = vmatprep.subr.bf16.mxu0 %v4619_v30 }
 0x90c   :  { %4372 = vmatmul.mubr.msk.bf16.vlgmr.msra.gmra.mxu0 %vm2373_vm14, %v4602_v10 }
 0x90d   :  { %4375 = vmatprep.mubr.msk.bf16.mxu0 %vm4769_vm0, %v4768_v0  ;;  %4172 = vmatpush3.bf16.msra.mxu0 %v4620_v32 }
 0x90e   :  { %4173 = vmatprep.subr.bf16.mxu0 %v4623_v34  ;;  %v4641_v34 = vld [vmem:[#allocation2 + $0x4a0] sm:$0xff]  }
 0x911   :  { %4174 = vmatpush3.bf16.msra.mxu0 %v4624_v35  ;;  %v4655_v35 = vld [vmem:[#allocation2 + $0x588] sm:$0xff]  }
 0x912   :  { %4175 = vmatprep.subr.bf16.mxu0 %v4627_v36  ;;  %v4656_v36 = vld [vmem:[#allocation2 + $0x548] sm:$0xff]  }
 0x914   :  { %4376 = vmatmul.mubr.msk.bf16.gmra.mxu0 %vm2373_vm14, %v4603_v11 }
 0x915   :  { %4379 = vmatprep.mubr.msk.bf16.mxu0 %vm4769_vm0, %v4768_v0  ;;  %4176 = vmatpush3.bf16.msra.mxu0 %v4628_v37 }
 0x916   :  { %4177 = vmatprep.subr.bf16.mxu0 %v4631_v38 }
 0x919   :  { %4178 = vmatpush3.bf16.msra.mxu0 %v4632_v39 }
 0x91a   :  { %4179 = vmatprep.subr.bf16.mxu0 %v4633_v40 }
 0x91c   :  { %4380 = vmatmul.mubr.msk.bf16.gmra.mxu0 %vm2373_vm14, %v4604_v12 }
 0x91d   :  { %4383 = vmatprep.mubr.msk.bf16.mxu0 %vm4769_vm0, %v4768_v0  ;;  %4180 = vmatpush3.bf16.msra.mxu0 %v4634_v41 }
 0x91e   :  { %4181 = vmatprep.subr.bf16.mxu0 %v4635_v42 }
 0x921   :  { %4182 = vmatpush3.bf16.msra.mxu0 %v4636_v43 }
 0x922   :  { %4183 = vmatprep.subr.bf16.mxu0 %v4637_v44 }
 0x924   :  { %4384 = vmatmul.mubr.msk.bf16.gmra.mxu0 %vm2373_vm14, %v4605_v13 }
 0x925   :  { %4387 = vmatprep.mubr.msk.bf16.mxu0 %vm4769_vm0, %v4768_v0  ;;  %4184 = vmatpush3.bf16.msra.mxu0 %v4638_v45 }
 0x926   :  { %4185 = vmatprep.subr.bf16.mxu0 %v4639_v47 }
 0x929   :  { %4186 = vmatpush3.bf16.msra.mxu0 %v4640_v49 }
 0x92a   :  { %4215 = vmatprep.subr.bf16.mxu0 %v4655_v35  ;;  %v4667_v35 = vld [vmem:[#allocation2 + $0x520] sm:$0xff]  }
 0x92c   :  { %4388 = vmatmul.mubr.msk.bf16.gmra.mxu0 %vm2373_vm14, %v4606_v14 }
 0x92d   :  { %4391 = vmatprep.mubr.msk.bf16.mxu0 %vm4769_vm0, %v4768_v0 }
 0x934   :  { %4392 = vmatmul.mubr.msk.bf16.gmra.mxu0 %vm2373_vm14, %v4607_v15 }
 0x935   :  { %4395 = vmatprep.mubr.msk.bf16.mxu0 %vm4769_vm0, %v4768_v0  ;;  %v4617_v0 = vld [vmem:[#allocation2 + $0x3f8] sm:$0xff]  }
 0x936   :  { %4151 = vmatprep.subr.bf16.mxu1 %v4617_v0 }
 0x937   :  { %4152 = vmatpush3.bf16.msra.mxu1 %v4618_v25 }
 0x938   :  { %4153 = vmatprep.subr.bf16.mxu1 %v4621_v26 }
 0x93b   :  { %4154 = vmatpush3.bf16.msra.mxu1 %v4622_v27 }
 0x93c   :  { %4396 = vmatmul.mubr.msk.bf16.gmra.mxu0 %vm2373_vm14, %v4608_v16  ;;  %4155 = vmatprep.subr.bf16.mxu1 %v4625_v28 }
 0x93f   :  { %4156 = vmatpush3.bf16.msra.mxu1 %v4626_v29 }
 0x940   :  { %4157 = vmatprep.subr.bf16.mxu1 %v4629_v31 }
 0x943   :  { %4158 = vmatpush3.bf16.msra.mxu1 %v4630_v33 }
 0x9cc   :  { %v2432_v50 = vpop.f32.mrf.mxu0 }
 0x9ce   :  { %v4373_v48 = vpop.f32.mrf.mxu0 }
 0x9d0   :  { %v2435_v53 = vpop.f32.mrf.mxu0 }
 0x9d1   :  { %v2517_v4 = vpack.c.bf16 %v2435_v53, %v2432_v50 }
 0x9d2   :  { %v4374_v54 = vpop.f32.mrf.mxu0 }
 0x9d4   :  { %v2440_v52 = vpop.f32.mrf.mxu0 }
 0x9d6   :  { %v4377_v55 = vpop.f32.mrf.mxu0 }
 0x9d8   :  { %v2443_v56 = vpop.f32.mrf.mxu0 }
 0x9d9   :  { %v2491_v62 = vrot.slane %v2443_v56, 4  ;;  %v2521_v12 = vpack.c.bf16 %v2443_v56, %v2440_v52  ;;  %v3846_v56 = vld [vmem:[%s5044_s4 + $0x4] ss:$0 sm:$0xff] }
 0x9da   :  { %v4378_v57 = vpop.f32.mrf.mxu0 }
 0x9dc   :  { %v2448_v58 = vpop.f32.mrf.mxu0 }
 0x9dd   :  { %v2492_v46 = vrot.slane %v2448_v58, 4 }
 0x9de   :  { %v4381_v59 = vpop.f32.mrf.mxu0 }
 0x9df   :  { %v2493_v1 = vsel %vm137_vm1, %v2491_v62, %v2492_v46 }
 0x9e0   :  { %v2451_v61 = vpop.f32.mrf.mxu0 }
 0x9e1   :  { %v2494_v51 = vrot.slane %v2451_v61, 4 }
 0x9e2   :  { %v4382_v63 = vpop.f32.mrf.mxu0 }
 0x9e3   :  { %v2495_v2 = vsel %vm137_vm1, %v2492_v46, %v2494_v51 }
 0x9e4   :  { %v2456_v60 = vpop.f32.mrf.mxu0  ;;  %v2518_v3 = vpack.c.bf16 %v2495_v2, %v2493_v1 }
 0x9e5   :  { %v2496_v5 = vrot.slane %v2456_v60, 4 }
 0x9e6   :  { %v4385_v6 = vpop.f32.mrf.mxu0  ;;  %2820 = vmatprep.mubr.bf16.mxu1 %v2518_v3 }
 0x9e7   :  { %v2497_v8 = vsel %vm137_vm1, %v2494_v51, %v2496_v5  ;;  %2821 = vmatmul.mubr.bf16.vlgmr.msra.gmra.mxu1 %v2517_v4 }
 0x9e8   :  { %v2522_v7 = vpack.c.bf16 %v2496_v5, %v2497_v8  ;;  %v2459_v9 = vpop.f32.mrf.mxu0 }
 0x9ea   :  { %v4386_v10 = vpop.f32.mrf.mxu0  ;;  %2828 = vmatprep.mubr.bf16.mxu1 %v2522_v7 }
 0x9ec   :  { %v2464_v11 = vpop.f32.mrf.mxu0 }
 0x9ed   :  { %v2519_v28 = vpack.c.bf16 %v2464_v11, %v2459_v9 }
 0x9ee   :  { %v4389_v13 = vpop.f32.mrf.mxu0 }
 0x9ef   :  { %2829 = vmatmul.mubr.bf16.gmra.mxu1 %v2521_v12 }
 0x9f0   :  { %v2467_v14 = vpop.f32.mrf.mxu0  ;;  %4403 = vmatprep.mubr.msk.bf16.mxu1 %vm660_vm3, %v4641_v34  ;;  %v4665_v34 = vld [vmem:[#allocation2 + $0x560] sm:$0xff]  }
 0x9f2   :  { %v4390_v15 = vpop.f32.mrf.mxu0 }
 0x9f3   :  { %v4643_v15 = vld [vmem:[#allocation2 + $0x4b0] sm:$0xff]  }
 0x9f4   :  { %v2472_v16 = vpop.f32.mrf.mxu0 }
 0x9f5   :  { %v2506_v22 = vrot.slane %v2472_v16, 4  ;;  %v2523_v33 = vpack.c.bf16 %v2472_v16, %v2467_v14  ;;  %v4642_v14 = vld [vmem:[#allocation2 + $0x4a8] sm:$0xff]   ;;  %v4644_v16 = vld [vmem:[#allocation2 + $0x4b8] sm:$0xff]  }
 0x9f6   :  { %v4393_v17 = vpop.f32.mrf.mxu0 }
 0x9f7   :  { %v4645_v17 = vld [vmem:[#allocation2 + $0x4c0] sm:$0xff]  }
 0x9f8   :  { %v2475_v18 = vpop.f32.mrf.mxu0 }
 0x9f9   :  { %v2507_v20 = vrot.slane %v2475_v18, 4  ;;  %v4646_v18 = vld [vmem:[#allocation2 + $0x4c8] sm:$0xff]  }
 0x9fa   :  { %v4394_v19 = vpop.f32.mrf.mxu0 }
 0x9fb   :  { %v2508_v0 = vsel %vm137_vm1, %v2506_v22, %v2507_v20  ;;  %v4647_v19 = vld [vmem:[#allocation2 + $0x4d0] sm:$0xff]   ;;  %v4650_v22 = vld [vmem:[#allocation2 + $0x4e8] sm:$0xff]  }
 0x9fc   :  { %v2480_v21 = vpop.f32.mrf.mxu0 }
 0x9fd   :  { %v2509_v23 = vrot.slane %v2480_v21, 4  ;;  %v4649_v21 = vld [vmem:[#allocation2 + $0x4e0] sm:$0xff]  }
 0x9fe   :  { %v4397_v24 = vpop.f32.mrf.mxu0 }
 0x9ff   :  { %v2510_v25 = vsel %vm137_vm1, %v2507_v20, %v2509_v23  ;;  %v4648_v20 = vld [vmem:[#allocation2 + $0x4d8] sm:$0xff]  }
 0xa00   :  { %v2520_v26 = vpack.c.bf16 %v2510_v25, %v2508_v0  ;;  %v2483_v27 = vpop.f32.mrf.mxu0  ;;  %v4652_v24 = vld [vmem:[#allocation2 + $0x4f8] sm:$0xff]   ;;  %v4653_v0 = vld [vmem:[#allocation2 + $0x500] sm:$0xff]   ;;  %v4654_v25 = vld [vmem:[#allocation2 + $0x508] sm:$0xff]  }
 0xa01   :  { %v2511_v29 = vrot.slane %v2483_v27, 4  ;;  %v4658_v27 = vld [vmem:[#allocation2 + $0x540] sm:$0xff]  }
 0xa02   :  { %2869 = vmatprep.mubr.bf16.mxu0 %v2520_v26  ;;  %v4398_v30 = vpop.f32.mrf.mxu0  ;;  %v4657_v26 = vld [vmem:[#allocation2 + $0x580] sm:$0xff]  }
 0xa03   :  { %2870 = vmatmul.mubr.bf16.vlgmr.msra.gmra.mxu0 %v2519_v28  ;;  %v2512_v31 = vsel %vm137_vm1, %v2509_v23, %v2511_v29  ;;  %v4651_v23 = vld [vmem:[#allocation2 + $0x4f0] sm:$0xff]   ;;  %v4659_v28 = vld [vmem:[#allocation2 + $0x578] sm:$0xff]  }
 0xa04   :  { %v2524_v32 = vpack.c.bf16 %v2511_v29, %v2512_v31  ;;  %4216 = vmatpush3.bf16.msra.mxu0 %v4656_v36  ;;  %v4660_v29 = vld [vmem:[#allocation2 + $0x538] sm:$0xff]   ;;  %v4661_v30 = vld [vmem:[#allocation2 + $0x570] sm:$0xff]  }
 0xa05   :  { %4217 = vmatprep.subr.bf16.mxu0 %v4657_v26  ;;  %v4662_v31 = vld [vmem:[#allocation2 + $0x530] sm:$0xff]   ;;  %v4669_v36 = vld [vmem:[#allocation2 + $0x558] sm:$0xff]  }
 0xa06   :  { %2877 = vmatprep.mubr.bf16.mxu0 %v2524_v32  ;;  %v4663_v32 = vld [vmem:[#allocation2 + $0x568] sm:$0xff]  }
 0xa08   :  { %4218 = vmatpush3.bf16.msra.mxu0 %v4658_v27 }
 0xa09   :  { %4219 = vmatprep.subr.bf16.mxu0 %v4659_v28 }
 0xa0b   :  { %2878 = vmatmul.mubr.bf16.gmra.mxu0 %v2523_v33  ;;  %v4664_v33 = vld [vmem:[#allocation2 + $0x528] sm:$0xff]  }
 0xa0c   :  { %4220 = vmatpush3.bf16.msra.mxu0 %v4660_v29 }
 0xa0d   :  { %4221 = vmatprep.subr.bf16.mxu0 %v4661_v30 }
 0xa10   :  { %4222 = vmatpush3.bf16.msra.mxu0 %v4662_v31 }
 0xa11   :  { %4223 = vmatprep.subr.bf16.mxu0 %v4663_v32 }
 0xa14   :  { %4224 = vmatpush3.bf16.msra.mxu0 %v4664_v33 }
 0xa15   :  { %4225 = vmatprep.subr.bf16.mxu0 %v4665_v34 }
 0xa18   :  { %4226 = vmatpush3.bf16.msra.mxu0 %v4667_v35 }
 0xa19   :  { %4227 = vmatprep.subr.bf16.mxu0 %v4669_v36 }
 0xaa7   :  { %v4159_v37 = vpop.f32.mrf.mxu1 }
 0xaa9   :  { %v4160_v38 = vpop.f32.mrf.mxu1 }
 0xaaa   :  { %v4161_v52 = vadd.f32 %v4160_v38, %v4159_v37  ;;  %v4671_v37 = vld [vmem:[#allocation2 + $0x518] sm:$0xff]   ;;  %v4666_v38 = vld [vmem:[#allocation2 + $0x608] sm:$0xff]  }
 0xaab   :  { %v4162_v39 = vpop.f32.mrf.mxu1  ;;  %4228 = vmatpush3.bf16.msra.mxu0 %v4671_v37 }
 0xaac   :  { %v2823_v63 = vadd.f32 %v4161_v52, %v3846_v56  ;;  %v4683_v52 = vld [vmem:[#allocation2 + $0x5d8] sm:$0xff]  }
 0xaad   :  { %v4163_v40 = vpop.f32.mrf.mxu1 }
 0xaae   :  { %v4164_v53 = vadd.f32 %v4163_v40, %v4162_v39  ;;  %v4673_v39 = vld [vmem:[#allocation2 + $0x550] sm:$0xff]   ;;  %v4668_v40 = vld [vmem:[#allocation2 + $0x5c8] sm:$0xff]  }
 0xaaf   :  { %v4165_v41 = vpop.f32.mrf.mxu1  ;;  %4229 = vmatprep.subr.bf16.mxu0 %v4673_v39 }
 0xab0   :  { %v2826_v61 = vadd.f32 %v4164_v53, %v3846_v56  ;;  %v4681_v53 = vld [vmem:[#allocation2 + $0x5e0] sm:$0xff]  }
 0xab1   :  { %v4166_v42 = vpop.f32.mrf.mxu1 }
 0xab2   :  { %v4167_v54 = vadd.f32 %v4166_v42, %v4165_v41  ;;  %v4675_v41 = vld [vmem:[#allocation2 + $0x510] sm:$0xff]   ;;  %v4670_v42 = vld [vmem:[#allocation2 + $0x600] sm:$0xff]  }
 0xab3   :  { %v4168_v45 = vpop.f32.mrf.mxu1  ;;  %4230 = vmatpush3.bf16.msra.mxu0 %v4675_v41 }
 0xab4   :  { %v2831_v62 = vadd.f32 %v4167_v54, %v3846_v56  ;;  %v4682_v54 = vld [vmem:[#allocation2 + $0x5a0] sm:$0xff]  }
 0xab5   :  { %v4169_v50 = vpop.f32.mrf.mxu1 }
 0xab6   :  { %v4170_v57 = vadd.f32 %v4169_v50, %v4168_v45  ;;  %v4676_v45 = vld [vmem:[#allocation2 + $0x5b8] sm:$0xff]   ;;  %v4679_v50 = vld [vmem:[#allocation2 + $0x5e8] sm:$0xff]  }
 0xab8   :  { %v2834_v2 = vadd.f32 %v4170_v57, %v3846_v56  ;;  %v4685_v56 = vld [vmem:[#allocation2 + $0x5d0] sm:$0xff]  }
 0xab9   :  { %v4686_v57 = vld [vmem:[#allocation2 + $0x590] sm:$0xff]  }
 0xac3   :  { %v4187_v43 = vpop.f32.mrf.mxu0 }
 0xac5   :  { %v4188_v44 = vpop.f32.mrf.mxu0 }
 0xac6   :  { %v4189_v51 = vadd.f32 %v4188_v44, %v4187_v43  ;;  %v4672_v43 = vld [vmem:[#allocation2 + $0x5c0] sm:$0xff]   ;;  %v4674_v44 = vld [vmem:[#allocation2 + $0x5f8] sm:$0xff]  }
 0xac7   :  { %v4190_v47 = vpop.f32.mrf.mxu0 }
 0xac8   :  { %v2872_v5 = vadd.f32 %v4189_v51, %v2823_v63 }
 0xac9   :  { %v4191_v49 = vpop.f32.mrf.mxu0 }
 0xaca   :  { %v4192_v58 = vadd.f32 %v4191_v49, %v4190_v47  ;;  %v2886_v10 = vmax.f32 %v2872_v5, 0.0  ;;  %v4677_v47 = vld [vmem:[#allocation2 + $0x5f0] sm:$0xff]  }
 0xacb   :  { %v4193_v48 = vpop.f32.mrf.mxu0  ;;  %v4678_v49 = vld [vmem:[#allocation2 + $0x5b0] sm:$0xff]  }
 0xacc   :  { %v2875_v60 = vadd.f32 %v4192_v58, %v2826_v61 }
 0xacd   :  { %v4194_v55 = vpop.f32.mrf.mxu0 }
 0xace   :  { %v4195_v59 = vadd.f32 %v4194_v55, %v4193_v48  ;;  %v2887_v8 = vmax.f32 %v2875_v60, 0.0  ;;  %v4680_v48 = vld [vmem:[#allocation2 + $0x5a8] sm:$0xff]   ;;  %v4684_v55 = vld [vmem:[#allocation2 + $0x598] sm:$0xff]  }
 0xacf   :  { %v4196_v46 = vpop.f32.mrf.mxu0 }
 0xad0   :  { %v2880_v3 = vadd.f32 %v4195_v59, %v2831_v62  ;;  %v2890_v13 = vpack.c.bf16 %v2887_v8, %v2886_v10 }
 0xad1   :  { %v4197_v1 = vpop.f32.mrf.mxu0 }
 0xad2   :  { %v4198_v4 = vadd.f32 %v4197_v1, %v4196_v46  ;;  %v2888_v7 = vmax.f32 %v2880_v3, 0.0 }
 0xad4   :  { %v2883_v6 = vadd.f32 %v4198_v4, %v2834_v2 }
 0xad6   :  { %v2889_v9 = vmax.f32 %v2883_v6, 0.0 }
 0xad8   :  { %v2891_v11 = vpack.c.bf16 %v2889_v9, %v2888_v7 }
 0xada   :  { %4433 = vmatprep.subr.msk.bf16.mxu1 %vm673_vm4, %v2891_v11  ;;  %v3033_v12 = vsel %vm673_vm4, %v2891_v11, 0 }
 0xadb   :  { %4400 = vmatpush3.bf16.msra.mxu1 %v3033_v12 }
 0xadc   :  { %4401 = vmatprep.subr.bf16.mxu1 %v2890_v13 }
 0xadf   :  { %4402 = vmatpush3.bf16.msra.mxu1 %v2890_v13 }
 0xae0   :  { %4255 = vmatprep.subr.bf16.mxu1 %v4666_v38 }
 0xae2   :  { %4404 = vmatmul.mubr.msk.bf16.vlgmr.msra.gmra.mxu1 %vm660_vm3, %v4642_v14 }
 0xae3   :  { %4407 = vmatprep.mubr.msk.bf16.mxu1 %vm660_vm3, %v4643_v15  ;;  %4256 = vmatpush3.bf16.msra.mxu1 %v4668_v40 }
 0xae4   :  { %4257 = vmatprep.subr.bf16.mxu1 %v4670_v42 }
 0xae7   :  { %4258 = vmatpush3.bf16.msra.mxu1 %v4672_v43 }
 0xae8   :  { %4259 = vmatprep.subr.bf16.mxu1 %v4674_v44 }
 0xaea   :  { %4408 = vmatmul.mubr.msk.bf16.gmra.mxu1 %vm660_vm3, %v4644_v16 }
 0xaeb   :  { %4411 = vmatprep.mubr.msk.bf16.mxu1 %vm660_vm3, %v4645_v17  ;;  %4260 = vmatpush3.bf16.msra.mxu1 %v4676_v45 }
 0xaec   :  { %4261 = vmatprep.subr.bf16.mxu1 %v4677_v47 }
 0xaef   :  { %4262 = vmatpush3.bf16.msra.mxu1 %v4678_v49 }
 0xaf0   :  { %4263 = vmatprep.subr.bf16.mxu1 %v4679_v50 }
 0xaf2   :  { %4412 = vmatmul.mubr.msk.bf16.gmra.mxu1 %vm660_vm3, %v4646_v18 }
 0xaf3   :  { %4415 = vmatprep.mubr.msk.bf16.mxu1 %vm660_vm3, %v4647_v19  ;;  %4264 = vmatpush3.bf16.msra.mxu1 %v4680_v48 }
 0xaf4   :  { %4265 = vmatprep.subr.bf16.mxu1 %v4681_v53 }
 0xaf7   :  { %4266 = vmatpush3.bf16.msra.mxu1 %v4682_v54  ;;  %v3907_v54 = vld [vmem:[%s5044_s4 + $0x5] ss:$0 sm:$0xff]  ;;  %s4774_s4 = smov [#allocation5]  }
 0xaf8   :  { %4267 = vmatprep.subr.bf16.mxu1 %v4683_v52  ;;  %s3641_s30 = sshll.u32 %s4774_s4, 4  ;;  %s3642_s30 = int_to_ptr.vmem [resolvable:$true] %s3641_s30 }
 0xaf9   :  { %s4741_s7 = scalar_lea.vmem %s3642_s30, 896  ;;  %p4746_p6 = scmp.lt.s32.totalorder %s3642_s30, %s3642_s30 }
 0xafa   :  { %4416 = vmatmul.mubr.msk.bf16.gmra.mxu1 %vm660_vm3, %v4648_v20  ;;  %p4742_p5 = scmp.ne.s32.totalorder %s3642_s30, %s4741_s7  ;;  %p4747_p7 = scmp.lt.s32.totalorder %s4741_s7, %s4741_s7 }
 0xafb   :  { %4419 = vmatprep.mubr.msk.bf16.mxu1 %vm660_vm3, %v4649_v21  ;;  %4268 = vmatpush3.bf16.msra.mxu1 %v4684_v55 }
 0xafc   :  { %4269 = vmatprep.subr.bf16.mxu1 %v4685_v56  ;;  %p4748_p8 = por %p4747_p7, %p4746_p6 }
 0xafe   :  { %p4749_p9 = pnand %p4748_p8, %p4742_p5 }
 0xaff   :  { %4270 = vmatpush3.bf16.msra.mxu1 %v4686_v57 }
 0xb02   :  { %4420 = vmatmul.mubr.msk.bf16.gmra.mxu1 %vm660_vm3, %v4650_v22 }
 0xb03   :  { %4423 = vmatprep.mubr.msk.bf16.mxu1 %vm660_vm3, %v4651_v23 }
 0xb0a   :  { %4424 = vmatmul.mubr.msk.bf16.gmra.mxu1 %vm660_vm3, %v4652_v24 }
 0xb0b   :  { %4427 = vmatprep.mubr.msk.bf16.mxu1 %vm660_vm3, %v4653_v0 }
 0xb12   :  { %4428 = vmatmul.mubr.msk.bf16.gmra.mxu1 %vm660_vm3, %v4654_v25 }
 0xba2   :  { %v4405_v58 = vpop.f32.mrf.mxu1 }
 0xba4   :  { %v3069_v59 = vpop.f32.mrf.mxu1 }
 0xba6   :  { %v4406_v46 = vpop.f32.mrf.mxu1 }
 0xba7   :  { %v3184_v10 = vpack.c.bf16 %v4406_v46, %v4405_v58 }
 0xba8   :  { %v3072_v61 = vpop.f32.mrf.mxu1 }
 0xba9   :  { %v3180_v4 = vpack.c.bf16 %v3072_v61, %v3069_v59 }
 0xbaa   :  { %v4409_v62 = vpop.f32.mrf.mxu1 }
 0xbab   :  { %v3192_v22 = vpack.c.bf16 %v4409_v62, %v4409_v62 }
 0xbac   :  { %v3085_v51 = vpop.f32.mrf.mxu1 }
 0xbae   :  { %v4410_v63 = vpop.f32.mrf.mxu1 }
 0xbb0   :  { %v3088_v1 = vpop.f32.mrf.mxu1 }
 0xbb1   :  { %v3188_v16 = vpack.c.bf16 %v3088_v1, %v3085_v51 }
 0xbb2   :  { %v4413_v2 = vpop.f32.mrf.mxu1 }
 0xbb4   :  { %v3101_v60 = vpop.f32.mrf.mxu1 }
 0xbb5   :  { %v3181_v3 = vpack.c.bf16 %v3101_v60, %v4410_v63 }
 0xbb6   :  { %v4414_v5 = vpop.f32.mrf.mxu1 }
 0xbb7   :  { %3491 = vmatprep.mubr.bf16.mxu0 %v3181_v3 }
 0xbb8   :  { %v3104_v6 = vpop.f32.mrf.mxu1  ;;  %3492 = vmatmul.mubr.bf16.vlgmr.msra.gmra.mxu0 %v3180_v4 }
 0xbb9   :  { %v3185_v8 = vpack.c.bf16 %v4413_v2, %v3104_v6 }
 0xbba   :  { %v4417_v7 = vpop.f32.mrf.mxu1 }
 0xbbb   :  { %3499 = vmatprep.mubr.bf16.mxu0 %v3185_v8 }
 0xbbc   :  { %v3117_v9 = vpop.f32.mrf.mxu1 }
 0xbbd   :  { %v3189_v12 = vpack.c.bf16 %v3117_v9, %v4414_v5 }
 0xbbe   :  { %v4418_v11 = vpop.f32.mrf.mxu1 }
 0xbbf   :  { %v3182_v25 = vpack.c.bf16 %v4418_v11, %v4417_v7 }
 0xbc0   :  { %v3120_v13 = vpop.f32.mrf.mxu1  ;;  %3500 = vmatmul.mubr.bf16.gmra.mxu0 %v3184_v10 }
 0xbc1   :  { %3507 = vmatprep.mubr.bf16.mxu0 %v3189_v12  ;;  %v3193_v18 = vpack.c.bf16 %v3120_v13, %v3120_v13 }
 0xbc2   :  { %v4421_v14 = vpop.f32.mrf.mxu1 }
 0xbc4   :  { %v3133_v15 = vpop.f32.mrf.mxu1 }
 0xbc6   :  { %v4422_v17 = vpop.f32.mrf.mxu1 }
 0xbc7   :  { %v3190_v33 = vpack.c.bf16 %v4422_v17, %v4421_v14 }
 0xbc8   :  { %v3136_v19 = vpop.f32.mrf.mxu1  ;;  %3508 = vmatmul.mubr.bf16.gmra.mxu0 %v3188_v16 }
 0xbc9   :  { %3515 = vmatprep.mubr.bf16.mxu0 %v3193_v18  ;;  %v3186_v31 = vpack.c.bf16 %v3136_v19, %v3133_v15 }
 0xbca   :  { %v4425_v20 = vpop.f32.mrf.mxu1 }
 0xbcc   :  { %v3149_v21 = vpop.f32.mrf.mxu1 }
 0xbcd   :  { %v3194_v35 = vpack.c.bf16 %v3149_v21, %v3149_v21 }
 0xbce   :  { %v4426_v23 = vpop.f32.mrf.mxu1 }
 0xbd0   :  { %v3152_v24 = vpop.f32.mrf.mxu1  ;;  %3516 = vmatmul.mubr.bf16.gmra.mxu0 %v3192_v22 }
 0xbd1   :  { %v3183_v0 = vpack.c.bf16 %v4425_v20, %v3152_v24 }
 0xbd2   :  { %v4429_v26 = vpop.f32.mrf.mxu1 }
 0xbd3   :  { %3555 = vmatprep.mubr.bf16.mxu1 %v3183_v0 }
 0xbd4   :  { %3556 = vmatmul.mubr.bf16.vlgmr.msra.gmra.mxu1 %v3182_v25  ;;  %v3165_v27 = vpop.f32.mrf.mxu1 }
 0xbd5   :  { %v3187_v28 = vpack.c.bf16 %v3165_v27, %v4426_v23 }
 0xbd6   :  { %v4430_v29 = vpop.f32.mrf.mxu1 }
 0xbd7   :  { %3563 = vmatprep.mubr.bf16.mxu1 %v3187_v28  ;;  %v3195_v34 = vpack.c.bf16 %v4430_v29, %v4430_v29 }
 0xbd8   :  { %v3168_v30 = vpop.f32.mrf.mxu1 }
 0xbd9   :  { %v3191_v32 = vpack.c.bf16 %v4429_v26, %v3168_v30 }
 0xbdc   :  { %3564 = vmatmul.mubr.bf16.gmra.mxu1 %v3186_v31 }
 0xbdd   :  { %3571 = vmatprep.mubr.bf16.mxu1 %v3191_v32 }
 0xbe4   :  { %3572 = vmatmul.mubr.bf16.gmra.mxu1 %v3190_v33 }
 0xbe5   :  { %3579 = vmatprep.mubr.bf16.mxu1 %v3195_v34 }
 0xbec   :  { %3580 = vmatmul.mubr.bf16.gmra.mxu1 %v3194_v35 }
 0xc78   :  { %v4231_v36 = vpop.f32.mrf.mxu0 }
 0xc7a   :  { %v4232_v37 = vpop.f32.mrf.mxu0 }
 0xc7b   :  { %v4233_v53 = vadd.f32 %v4232_v37, %v4231_v36 }
 0xc7c   :  { %v4234_v38 = vpop.f32.mrf.mxu0 }
 0xc7d   :  { %v3494_v58 = vadd.f32 %v4233_v53, %v3907_v54 }
 0xc7e   :  { %v4235_v39 = vpop.f32.mrf.mxu0 }
 0xc7f   :  { %v4236_v59 = vadd.f32 %v4235_v39, %v4234_v38 }
 0xc80   :  { %v4237_v40 = vpop.f32.mrf.mxu0 }
 0xc81   :  { %v3497_v63 = vadd.f32 %v4236_v59, %v3907_v54 }
 0xc82   :  { %v4238_v41 = vpop.f32.mrf.mxu0 }
 0xc83   :  { %v4239_v1 = vadd.f32 %v4238_v41, %v4237_v40 }
 0xc84   :  { %v4240_v42 = vpop.f32.mrf.mxu0 }
 0xc85   :  { %v3502_v7 = vadd.f32 %v4239_v1, %v3907_v54 }
 0xc86   :  { %v4241_v43 = vpop.f32.mrf.mxu0 }
 0xc87   :  { %v4242_v6 = vadd.f32 %v4241_v43, %v4240_v42 }
 0xc88   :  { %v4243_v44 = vpop.f32.mrf.mxu0 }
 0xc89   :  { %v3505_v14 = vadd.f32 %v4242_v6, %v3907_v54 }
 0xc8a   :  { %v4244_v45 = vpop.f32.mrf.mxu0 }
 0xc8b   :  { %v4245_v16 = vadd.f32 %v4244_v45, %v4243_v44 }
 0xc8c   :  { %v4246_v47 = vpop.f32.mrf.mxu0 }
 0xc8d   :  { %v3510_v24 = vadd.f32 %v4245_v16, %v3907_v54 }
 0xc8e   :  { %v4247_v49 = vpop.f32.mrf.mxu0 }
 0xc8f   :  { %v4248_v22 = vadd.f32 %v4247_v49, %v4246_v47 }
 0xc90   :  { %v4249_v50 = vpop.f32.mrf.mxu0 }
 0xc91   :  { %v3513_v29 = vadd.f32 %v4248_v22, %v3907_v54 }
 0xc92   :  { %v4250_v48 = vpop.f32.mrf.mxu0 }
 0xc93   :  { %v4251_v31 = vadd.f32 %v4250_v48, %v4249_v50 }
 0xc94   :  { %v4271_v52 = vpop.f32.mrf.mxu1  ;;  %v4252_v55 = vpop.f32.mrf.mxu0 }
 0xc95   :  { %v3518_v40 = vadd.f32 %v4251_v31, %v3907_v54 }
 0xc96   :  { %v4272_v56 = vpop.f32.mrf.mxu1  ;;  %v4253_v57 = vpop.f32.mrf.mxu0 }
 0xc97   :  { %v4273_v46 = vadd.f32 %v4272_v56, %v4271_v52 }
 0xc98   :  { %v4274_v61 = vpop.f32.mrf.mxu1 }
 0xc99   :  { %v3558_v62 = vadd.f32 %v4273_v46, %v3494_v58 }
 0xc9a   :  { %v4275_v51 = vpop.f32.mrf.mxu1 }
 0xc9b   :  { %v3587_v2 = vsub.f32 0.0, %v3558_v62  ;;  %v4276_v60 = vadd.f32 %v4275_v51, %v4274_v61 }
 0xc9c   :  { %v4277_v3 = vpop.f32.mrf.mxu1 }
 0xc9d   :  { %v3594_v4 = vmul.f32 1.442695, %v3587_v2  ;;  %v3561_v5 = vadd.f32 %v4276_v60, %v3497_v63 }
 0xc9e   :  { %v4278_v8 = vpop.f32.mrf.mxu1 }
 0xc9f   :  { %4693 = vpow2.f32 %v3594_v4  ;;  %v3588_v9 = vsub.f32 0.0, %v3561_v5  ;;  %v4279_v10 = vadd.f32 %v4278_v8, %v4277_v3 }
 0xca0   :  { %v4280_v11 = vpop.f32.mrf.mxu1 }
 0xca1   :  { %v3596_v12 = vmul.f32 1.442695, %v3588_v9  ;;  %v3566_v13 = vadd.f32 %v4279_v10, %v3502_v7 }
 0xca2   :  { %v4281_v15 = vpop.f32.mrf.mxu1 }
 0xca3   :  { %4695 = vpow2.f32 %v3596_v12  ;;  %v3589_v17 = vsub.f32 0.0, %v3566_v13  ;;  %v4282_v18 = vadd.f32 %v4281_v15, %v4280_v11 }
 0xca4   :  { %v4283_v19 = vpop.f32.mrf.mxu1 }
 0xca5   :  { %v3598_v20 = vmul.f32 1.442695, %v3589_v17  ;;  %v3569_v21 = vadd.f32 %v4282_v18, %v3505_v14 }
 0xca6   :  { %v4284_v23 = vpop.f32.mrf.mxu1 }
 0xca7   :  { %4697 = vpow2.f32 %v3598_v20  ;;  %v3590_v0 = vsub.f32 0.0, %v3569_v21  ;;  %v4285_v25 = vadd.f32 %v4284_v23, %v4283_v19 }
 0xca8   :  { %v4286_v26 = vpop.f32.mrf.mxu1 }
 0xca9   :  { %v3600_v27 = vmul.f32 1.442695, %v3590_v0  ;;  %v3574_v28 = vadd.f32 %v4285_v25, %v3510_v24 }
 0xcaa   :  { %v4287_v30 = vpop.f32.mrf.mxu1 }
 0xcab   :  { %4699 = vpow2.f32 %v3600_v27  ;;  %v3591_v32 = vsub.f32 0.0, %v3574_v28  ;;  %v4288_v33 = vadd.f32 %v4287_v30, %v4286_v26 }
 0xcac   :  { %v4694_v34 = vpop.eup %4693  ;;  %v4289_v35 = vpop.f32.mrf.mxu1 }
 0xcad   :  { %v3608_v36 = vadd.f32 1.0, %v4694_v34  ;;  %v3602_v37 = vmul.f32 1.442695, %v3591_v32  ;;  %v3577_v38 = vadd.f32 %v4288_v33, %v3513_v29 }
 0xcae   :  { %v4290_v39 = vpop.f32.mrf.mxu1 }
 0xcaf   :  { %4701 = vrcp.f32 %v3608_v36  ;;  %v3592_v41 = vsub.f32 0.0, %v3577_v38  ;;  %v4291_v42 = vadd.f32 %v4290_v39, %v4289_v35 }
 0xcb0   :  { %v4696_v43 = vpop.eup %4695  ;;  %4703 = vpow2.f32 %v3602_v37  ;;  %v4292_v44 = vpop.f32.mrf.mxu1 }
 0xcb1   :  { %v3609_v45 = vadd.f32 1.0, %v4696_v43  ;;  %v3604_v47 = vmul.f32 1.442695, %v3592_v41  ;;  %v3582_v49 = vadd.f32 %v4291_v42, %v3518_v40 }
 0xcb2   :  { %v4293_v50 = vpop.f32.mrf.mxu1 }
 0xcb3   :  { %4705 = vrcp.f32 %v3609_v45  ;;  %v3593_v48 = vsub.f32 0.0, %v3582_v49 }
 0xcb4   :  { %v4698_v53 = vpop.eup %4697  ;;  %4707 = vpow2.f32 %v3604_v47 }
 0xcb5   :  { %v3610_v52 = vadd.f32 1.0, %v4698_v53  ;;  %v3606_v55 = vmul.f32 1.442695, %v3593_v48 }
 0xcb7   :  { %4709 = vrcp.f32 %v3610_v52 }
 0xcb8   :  { %v4700_v56 = vpop.eup %4699  ;;  %4711 = vpow2.f32 %v3606_v55 }
 0xcb9   :  { %v3611_v57 = vadd.f32 1.0, %v4700_v56 }
 0xcbb   :  { %4713 = vrcp.f32 %v3611_v57 }
 0xcbc   :  { %v4702_v54 = vpop.eup %4701 }
 0xcbd   :  { %v4704_v58 = vpop.eup %4703  ;;  %3629 = vst [vmem:[#allocation5] sm:$0xff] %v4702_v54 }
 0xcbe   :  { %v3612_v59 = vadd.f32 1.0, %v4704_v58 }
 0xcc0   :  { %v4706_v46 = vpop.eup %4705  ;;  %4715 = vrcp.f32 %v3612_v59 }
 0xcc1   :  { %v4708_v61 = vpop.eup %4707  ;;  %3630 = vst [vmem:[#allocation5 + $0x8] sm:$0xff] %v4706_v46 }
 0xcc2   :  { %v3613_v62 = vadd.f32 1.0, %v4708_v61 }
 0xcc4   :  { %v4710_v51 = vpop.eup %4709  ;;  %4717 = vrcp.f32 %v3613_v62 }
 0xcc5   :  { %v4712_v63 = vpop.eup %4711  ;;  %3631 = vst [vmem:[#allocation5 + $0x10] sm:$0xff] %v4710_v51 }
 0xcc6   :  { %v3614_v1 = vadd.f32 1.0, %v4712_v63 }
 0xcc8   :  { %v4714_v2 = vpop.eup %4713  ;;  %4719 = vrcp.f32 %v3614_v1 }
 0xcc9   :  { %3632 = vst [vmem:[#allocation5 + $0x18] sm:$0xff] %v4714_v2 }
 0xccd   :  { %v4716_v60 = vpop.eup %4715 }
 0xcce   :  { %3633 = vst [vmem:[#allocation5 + $0x20] sm:$0xff] %v4716_v60 }
 0xcd1   :  { %v4718_v3 = vpop.eup %4717 }
 0xcd2   :  { %3634 = vst [vmem:[#allocation5 + $0x28] sm:$0xff] %v4718_v3 }
 0xcd5   :  { %v4720_v4 = vpop.eup %4719 }
 0xcd6   :  { %3635 = vst [vmem:[#allocation5 + $0x30] sm:$0xff] %v4720_v4 }
 0xcd7   :  { %4752 = shalt.err (!%p4749_p9)
}
 0xcd8   :  { %s4775_s2 = smov 128   ;;  %s4776_s8 = smov 8  }
 0xcd9   :  { %3647 = dma.vmem_to_hbm [thread:$0]  %s3642_s30, 896, %s5045_s5, [#allocation4], %s4775_s2, %s4775_s2, %s4776_s8  }
 0xcda   :  { %4763 = dma.done.wait [#allocation4], 896  }
 0xcdb   :  { %4764 = vsyncadd [#allocation4], 4294966400 }
 0xcdc   :  { %3655 = vsyncpa [#allocation3], 1 }
 0xcdd   :  { %3656 = vsyncpa [#allocation4], 1 }

</bundles_post_ra>
